<compile_context>
chip_gen: v6e
topology: v6e:2x2x1
jax: 0.10.0
libtpu: 0.0.40
codegen_flags: <defaults>
</compile_context>

<pallas_src>
import functools
import math

import jax
import jax.numpy as jnp
from jax.experimental import pallas as pl
from jax.experimental.pallas import tpu as pltpu

STD_MIN = math.exp(-20.0)
STD_MAX = math.exp(2.0)
LOG_2PI = math.log(2.0 * math.pi)


def _round_up(x, m):
    return ((x + m - 1) // m) * m


def actor_kernel(x_ref, e_ref, w1_ref, w2_ref, wh_ref, b_ref, out_ref,
                 *, n_states, n_actions):
    """One batch tile of the Actor forward pass.

    x_ref  : (TB, n_states)   f32   state tile
    e_ref  : (TB, n_actions)  f32   N(0,1) noise tile
    w1_ref : (n_states, H)    f32   first-layer weight (K tiny -> VPU FMA)
    w2_ref : (H, H)           bf16  trunk weight (MXU)
    wh_ref : (H, H)           bf16  fused head weight, cols [0:2*n_a] = [wmu|wstd]
    b_ref  : (3, H)           f32   packed biases: row0=b1, row1=b2, row2=[bmu|bstd|0..]
    out_ref: (TB, OUT_W)      f32   lane-dense slab: [2*tanh(x) | log_prob | 0..]
    """
    x = x_ref[...]
    e = e_ref[...]

    b1 = b_ref[0:1, :]
    b2 = b_ref[1:2, :]
    bh = b_ref[2:3, :]

    # ---- layer 1: K = n_states is tiny -> broadcast-FMA on the VPU (skip MXU).
    h = b1 + x[:, 0:1] * w1_ref[0:1, :]
    for i in range(1, n_states):          # static unroll, n_states is small
        h = h + x[:, i:i + 1] * w1_ref[i:i + 1, :]
    h = jnp.maximum(h, 0.0)

    # ---- layer 2: 128x128 on the MXU, bf16 operands, f32 accumulation.
    h = jnp.dot(h.astype(w2_ref.dtype), w2_ref[...],
                preferred_element_type=jnp.float32) + b2
    h = jnp.maximum(h, 0.0)

    # ---- fused heads: one matmul producing [mu | std_pre | 0-pad] lane-dense.
    head = jnp.dot(h.astype(wh_ref.dtype), wh_ref[...],
                   preferred_element_type=jnp.float32) + bh
    mu = head[:, :n_actions]
    std_pre = head[:, n_actions:2 * n_actions]

    # Softplus (stable) + clamp, matching torch.clamp(Softplus(.), exp(-20), exp(2)).
    std = jnp.clip(jnp.logaddexp(std_pre, 0.0), STD_MIN, STD_MAX)
    log_std = jnp.log(std)

    # Reparameterized sample + tanh squash; note (xs - mu) / std == e.
    xs = mu + e * std
    action = jnp.tanh(xs)

    log_prob = -0.5 * e * e - log_std - 0.5 * LOG_2PI
    log_prob = log_prob - jnp.log(1.0 - action * action + 1e-6)
    lp = jnp.mean(log_prob, axis=-1, keepdims=True)            # (TB, 1)

    # ---- single lane-dense output slab: one output DMA, one full-width store.
    pad = out_ref.shape[1] - (n_actions + 1)
    pieces = [2.0 * action, lp]
    if pad > 0:
        pieces.append(jnp.zeros((x.shape[0], pad), jnp.float32))
    out_ref[...] = jnp.concatenate(pieces, axis=-1)


def pack_params(params, *, matmul_dtype=jnp.bfloat16):
    """Pack the 8 per-layer arrays into 4 kernel inputs (fused head + packed biases)."""
    n_states, H = params["w1"].shape
    n_actions = params["wmu"].shape[1]
    assert 2 * n_actions <= H

    w_head = jnp.zeros((H, H), jnp.float32)
    w_head = w_head.at[:, :n_actions].set(params["wmu"])
    w_head = w_head.at[:, n_actions:2 * n_actions].set(params["wstd"])

    bias = jnp.zeros((3, H), jnp.float32)
    bias = bias.at[0, :].set(params["b1"].reshape(H))
    bias = bias.at[1, :].set(params["b2"].reshape(H))
    bias = bias.at[2, :n_actions].set(params["bmu"].reshape(n_actions))
    bias = bias.at[2, n_actions:2 * n_actions].set(params["bstd"].reshape(n_actions))

    return dict(
        w1=params["w1"].astype(jnp.float32),
        w2=params["w2"].astype(matmul_dtype),
        w_head=w_head.astype(matmul_dtype),
        bias=bias,
        n_states=n_states,
        n_actions=n_actions,
        hidden=H,
    )


def actor_forward(state, e, packed, *, block_b=128):
    """state: (B, n_states) f32, e: (B, n_actions) f32 standard-normal noise."""
    B = state.shape[0]
    n_states = packed["n_states"]
    n_actions = packed["n_actions"]
    H = packed["hidden"]
    out_w = max(128, _round_up(n_actions + 1, 128))     # lane-dense output slab

    tb = min(block_b, _round_up(B, 8))
    Bp = _round_up(B, tb)
    if Bp != B:
        state = jnp.pad(state, ((0, Bp - B), (0, 0)))
        e = jnp.pad(e, ((0, Bp - B), (0, 0)))

    kernel = functools.partial(actor_kernel, n_states=n_states, n_actions=n_actions)

    out = pl.pallas_call(
        kernel,
        out_shape=jax.ShapeDtypeStruct((Bp, out_w), jnp.float32),
        grid=(Bp // tb,),
        in_specs=[
            pl.BlockSpec((tb, n_states), lambda i: (i, 0)),    # state tile
            pl.BlockSpec((tb, n_actions), lambda i: (i, 0)),   # noise tile
            pl.BlockSpec((n_states, H), lambda i: (0, 0)),     # w1 (resident)
            pl.BlockSpec((H, H), lambda i: (0, 0)),            # w2 (resident)
            pl.BlockSpec((H, H), lambda i: (0, 0)),            # fused head (resident)
            pl.BlockSpec((3, H), lambda i: (0, 0)),            # packed biases (resident)
        ],
        out_specs=pl.BlockSpec((tb, out_w), lambda i: (i, 0)),
        compiler_params=pltpu.CompilerParams(dimension_semantics=("parallel",)),
    )(state, e, packed["w1"], packed["w2"], packed["w_head"], packed["bias"])

    action2 = out[:B, :n_actions]
    log_prob = out[:B, n_actions:n_actions + 1]
    return action2, log_prob


def actor_reference(state, e, params, *, matmul_dtype=jnp.bfloat16):
    """Pure-JAX reference with the same matmul operand dtype as the kernel."""
    h = jnp.maximum(state @ params["w1"] + params["b1"], 0.0)
    h = jnp.maximum(
        jnp.dot(h.astype(matmul_dtype), params["w2"].astype(matmul_dtype),
                preferred_element_type=jnp.float32) + params["b2"], 0.0)
    hm = h.astype(matmul_dtype)
    mu = jnp.dot(hm, params["wmu"].astype(matmul_dtype),
                 preferred_element_type=jnp.float32) + params["bmu"]
    std_pre = jnp.dot(hm, params["wstd"].astype(matmul_dtype),
                      preferred_element_type=jnp.float32) + params["bstd"]
    std = jnp.clip(jnp.logaddexp(std_pre, 0.0), STD_MIN, STD_MAX)
    xs = mu + e * std
    action = jnp.tanh(xs)
    log_prob = (-0.5 * jnp.square((xs - mu) / std) - jnp.log(std) - 0.5 * LOG_2PI
                - jnp.log(1.0 - action * action + 1e-6))
    return 2.0 * action, jnp.mean(log_prob, axis=-1, keepdims=True)


def init_params(key, n_states=3, n_actions=1, hidden=128):
    """Deterministic PyTorch-Linear-style init: U(-1/sqrt(fan_in), 1/sqrt(fan_in))."""
    def linear(k, fan_in, fan_out):
        kw, kb = jax.random.split(k)
        bound = 1.0 / math.sqrt(fan_in)
        w = jax.random.uniform(kw, (fan_in, fan_out), jnp.float32, -bound, bound)
        b = jax.random.uniform(kb, (1, fan_out), jnp.float32, -bound, bound)
        return w, b

    k1, k2, k3, k4 = jax.random.split(key, 4)
    w1, b1 = linear(k1, n_states, hidden)
    w2, b2 = linear(k2, hidden, hidden)
    wmu, bmu = linear(k3, hidden, n_actions)
    wstd, bstd = linear(k4, hidden, n_actions)
    return dict(w1=w1, b1=b1, w2=w2, b2=b2,
                wmu=wmu, bmu=bmu, wstd=wstd, bstd=bstd)


if __name__ == "__main__":
    key = jax.random.PRNGKey(0)
    kp, ks, ke = jax.random.split(key, 3)

    # Larger batch per review: fill MXU rows and exercise the parallel grid
    # axis (2 batch tiles -> both TensorCores on v7x). Data is still tiny.
    B, n_states, n_actions = 256, 3, 1
    params = init_params(kp, n_states=n_states, n_actions=n_actions)
    packed = pack_params(params)

    state = jax.random.normal(ks, (B, n_states), jnp.float32)
    # Standard-normal noise for the reparameterized sample, supplied as an
    # input (matching torch's Normal(0,1).sample(std.shape) done outside the MLP).
    e = jax.random.normal(ke, (B, n_actions), jnp.float32)

    action, log_prob = actor_forward(state, e, packed)
    jax.block_until_ready((action, log_prob))

    assert action.shape == (B, n_actions)
    assert log_prob.shape == (B, 1)
    assert bool(jnp.all(jnp.isfinite(action)))
    assert bool(jnp.all(jnp.isfinite(log_prob)))

    ref_action, ref_log_prob = actor_reference(state, e, params)
    assert jnp.allclose(action, ref_action, atol=1e-2, rtol=1e-2), \
        float(jnp.max(jnp.abs(action - ref_action)))
    assert jnp.allclose(log_prob, ref_log_prob, atol=2e-2, rtol=1e-2), \
        float(jnp.max(jnp.abs(log_prob - ref_log_prob)))

    print("KERNEL_OK")
</pallas_src>

<mosaic_0001>
module attributes {stable_mosaic.version = 11 : i64} {
  func.func @actor_kernel(%arg0: i32, %arg1: memref<128x3xf32, #tpu.memory_space<vmem>>, %arg2: memref<128x1xf32, #tpu.memory_space<vmem>>, %arg3: memref<3x128xf32, #tpu.memory_space<vmem>>, %arg4: memref<128x128xbf16, #tpu.memory_space<vmem>>, %arg5: memref<128x128xbf16, #tpu.memory_space<vmem>>, %arg6: memref<3x128xf32, #tpu.memory_space<vmem>>, %arg7: memref<128x128xf32, #tpu.memory_space<vmem>>) attributes {dimension_semantics = [#tpu.dimension_semantics<parallel>], iteration_bounds = array<i64: 2>, scalar_prefetch = 0 : i64, scratch_operands = 0 : i64, tpu.core_type = #tpu.core_type<tc>, window_params = [{transform_indices = @transform_0, window_bounds = array<i64: 128, 3>}, {transform_indices = @transform_1, window_bounds = array<i64: 128, 1>}, {pipeline_mode = #tpu.pipeline_mode<synchronous>, transform_indices = @transform_2, window_bounds = array<i64: 3, 128>}, {pipeline_mode = #tpu.pipeline_mode<synchronous>, transform_indices = @transform_3, window_bounds = array<i64: 128, 128>}, {pipeline_mode = #tpu.pipeline_mode<synchronous>, transform_indices = @transform_4, window_bounds = array<i64: 128, 128>}, {pipeline_mode = #tpu.pipeline_mode<synchronous>, transform_indices = @transform_5, window_bounds = array<i64: 3, 128>}, {transform_indices = @transform_6, window_bounds = array<i64: 128, 128>}]} {
    %c0 = arith.constant 0 : index
    %c0_0 = arith.constant 0 : index
    %0 = vector.load %arg1[%c0, %c0_0] : memref<128x3xf32, #tpu.memory_space<vmem>>, vector<128x3xf32>
    %c0_1 = arith.constant 0 : index
    %c0_2 = arith.constant 0 : index
    %1 = vector.load %arg2[%c0_1, %c0_2] : memref<128x1xf32, #tpu.memory_space<vmem>>, vector<128x1xf32>
    %c0_3 = arith.constant 0 : index
    %c0_4 = arith.constant 0 : index
    %2 = vector.load %arg6[%c0_3, %c0_4] : memref<3x128xf32, #tpu.memory_space<vmem>>, vector<1x128xf32>
    %c1 = arith.constant 1 : index
    %c0_5 = arith.constant 0 : index
    %3 = vector.load %arg6[%c1, %c0_5] : memref<3x128xf32, #tpu.memory_space<vmem>>, vector<1x128xf32>
    %c2 = arith.constant 2 : index
    %c0_6 = arith.constant 0 : index
    %4 = vector.load %arg6[%c2, %c0_6] : memref<3x128xf32, #tpu.memory_space<vmem>>, vector<1x128xf32>
    %5 = vector.extract_strided_slice %0 {offsets = [0, 0], sizes = [128, 1], strides = [1, 1]} : vector<128x3xf32> to vector<128x1xf32>
    %c0_7 = arith.constant 0 : index
    %c0_8 = arith.constant 0 : index
    %6 = vector.load %arg3[%c0_7, %c0_8] : memref<3x128xf32, #tpu.memory_space<vmem>>, vector<1x128xf32>
    %7 = vector.broadcast %5 : vector<128x1xf32> to vector<128x128xf32>
    %8 = vector.broadcast %6 : vector<1x128xf32> to vector<128x128xf32>
    %9 = arith.mulf %7, %8 : vector<128x128xf32>
    %10 = vector.broadcast %2 : vector<1x128xf32> to vector<128x128xf32>
    %11 = arith.addf %10, %9 : vector<128x128xf32>
    %12 = vector.extract_strided_slice %0 {offsets = [0, 1], sizes = [128, 1], strides = [1, 1]} : vector<128x3xf32> to vector<128x1xf32>
    %c1_9 = arith.constant 1 : index
    %c0_10 = arith.constant 0 : index
    %13 = vector.load %arg3[%c1_9, %c0_10] : memref<3x128xf32, #tpu.memory_space<vmem>>, vector<1x128xf32>
    %14 = vector.broadcast %12 : vector<128x1xf32> to vector<128x128xf32>
    %15 = vector.broadcast %13 : vector<1x128xf32> to vector<128x128xf32>
    %16 = arith.mulf %14, %15 : vector<128x128xf32>
    %17 = arith.addf %11, %16 : vector<128x128xf32>
    %18 = vector.extract_strided_slice %0 {offsets = [0, 2], sizes = [128, 1], strides = [1, 1]} : vector<128x3xf32> to vector<128x1xf32>
    %c2_11 = arith.constant 2 : index
    %c0_12 = arith.constant 0 : index
    %19 = vector.load %arg3[%c2_11, %c0_12] : memref<3x128xf32, #tpu.memory_space<vmem>>, vector<1x128xf32>
    %20 = vector.broadcast %18 : vector<128x1xf32> to vector<128x128xf32>
    %21 = vector.broadcast %19 : vector<1x128xf32> to vector<128x128xf32>
    %22 = arith.mulf %20, %21 : vector<128x128xf32>
    %23 = arith.addf %17, %22 : vector<128x128xf32>
    %cst = arith.constant 0.000000e+00 : f32
    %24 = vector.broadcast %cst : f32 to vector<128x128xf32>
    %25 = arith.maximumf %23, %24 : vector<128x128xf32>
    %26 = arith.truncf %25 : vector<128x128xf32> to vector<128x128xbf16>
    %c0_13 = arith.constant 0 : index
    %c0_14 = arith.constant 0 : index
    %27 = vector.load %arg4[%c0_13, %c0_14] : memref<128x128xbf16, #tpu.memory_space<vmem>>, vector<128x128xbf16>
    %cst_15 = arith.constant dense<0.000000e+00> : vector<128x128xf32>
    %28 = tpu.matmul %26, %27, %cst_15 {dimension_numbers = #tpu.dot_dimension_numbers<[1], [0], [0], [1], [0, 0, 1, 1], [], []>} : vector<128x128xbf16>, vector<128x128xbf16>, vector<128x128xf32> -> vector<128x128xf32>
    %29 = vector.broadcast %3 : vector<1x128xf32> to vector<128x128xf32>
    %30 = arith.addf %28, %29 : vector<128x128xf32>
    %cst_16 = arith.constant 0.000000e+00 : f32
    %31 = vector.broadcast %cst_16 : f32 to vector<128x128xf32>
    %32 = arith.maximumf %30, %31 : vector<128x128xf32>
    %33 = arith.truncf %32 : vector<128x128xf32> to vector<128x128xbf16>
    %c0_17 = arith.constant 0 : index
    %c0_18 = arith.constant 0 : index
    %34 = vector.load %arg5[%c0_17, %c0_18] : memref<128x128xbf16, #tpu.memory_space<vmem>>, vector<128x128xbf16>
    %cst_19 = arith.constant dense<0.000000e+00> : vector<128x128xf32>
    %35 = tpu.matmul %33, %34, %cst_19 {dimension_numbers = #tpu.dot_dimension_numbers<[1], [0], [0], [1], [0, 0, 1, 1], [], []>} : vector<128x128xbf16>, vector<128x128xbf16>, vector<128x128xf32> -> vector<128x128xf32>
    %36 = vector.broadcast %4 : vector<1x128xf32> to vector<128x128xf32>
    %37 = arith.addf %35, %36 : vector<128x128xf32>
    %38 = vector.extract_strided_slice %37 {offsets = [0, 0], sizes = [128, 1], strides = [1, 1]} : vector<128x128xf32> to vector<128x1xf32>
    %39 = vector.extract_strided_slice %37 {offsets = [0, 1], sizes = [128, 1], strides = [1, 1]} : vector<128x128xf32> to vector<128x1xf32>
    %cst_20 = arith.constant 0.000000e+00 : f32
    %40 = vector.broadcast %cst_20 : f32 to vector<128x1xf32>
    %41 = arith.maximumf %39, %40 : vector<128x1xf32>
    %42 = vector.broadcast %cst_20 : f32 to vector<128x1xf32>
    %43 = arith.subf %39, %42 : vector<128x1xf32>
    %44 = arith.cmpf one, %43, %43 : vector<128x1xf32>
    %45 = vector.broadcast %cst_20 : f32 to vector<128x1xf32>
    %46 = arith.addf %39, %45 : vector<128x1xf32>
    %47 = math.absf %43 : vector<128x1xf32>
    %cst_21 = arith.constant 0.000000e+00 : f32
    %48 = vector.broadcast %cst_21 : f32 to vector<128x1xf32>
    %49 = arith.subf %48, %47 : vector<128x1xf32>
    %50 = math.exp %49 : vector<128x1xf32>
    %51 = math.log1p %50 : vector<128x1xf32>
    %52 = arith.addf %41, %51 : vector<128x1xf32>
    %53 = arith.select %44, %46, %52 : vector<128x1xi1>, vector<128x1xf32>
    %cst_22 = arith.constant 2.06115369E-9 : f32
    %cst_23 = arith.constant 7.3890562 : f32
    %54 = vector.broadcast %cst_22 : f32 to vector<128x1xf32>
    %55 = arith.maximumf %54, %53 : vector<128x1xf32>
    %56 = vector.broadcast %cst_23 : f32 to vector<128x1xf32>
    %57 = arith.minimumf %56, %55 : vector<128x1xf32>
    %58 = math.log %57 : vector<128x1xf32>
    %59 = arith.mulf %1, %57 : vector<128x1xf32>
    %60 = arith.addf %38, %59 : vector<128x1xf32>
    %61 = math.tanh %60 : vector<128x1xf32>
    %cst_24 = arith.constant -5.000000e-01 : f32
    %62 = vector.broadcast %cst_24 : f32 to vector<128x1xf32>
    %63 = arith.mulf %62, %1 : vector<128x1xf32>
    %64 = arith.mulf %63, %1 : vector<128x1xf32>
    %65 = arith.subf %64, %58 : vector<128x1xf32>
    %cst_25 = arith.constant 0.918938517 : f32
    %66 = vector.broadcast %cst_25 : f32 to vector<128x1xf32>
    %67 = arith.subf %65, %66 : vector<128x1xf32>
    %68 = arith.mulf %61, %61 : vector<128x1xf32>
    %cst_26 = arith.constant 1.000000e+00 : f32
    %69 = vector.broadcast %cst_26 : f32 to vector<128x1xf32>
    %70 = arith.subf %69, %68 : vector<128x1xf32>
    %cst_27 = arith.constant 9.99999997E-7 : f32
    %71 = vector.broadcast %cst_27 : f32 to vector<128x1xf32>
    %72 = arith.addf %70, %71 : vector<128x1xf32>
    %73 = math.log %72 : vector<128x1xf32>
    %74 = arith.subf %67, %73 : vector<128x1xf32>
    %cst_28 = arith.constant dense<0.000000e+00> : vector<128xf32>
    %75 = vector.multi_reduction <add>, %74, %cst_28 [1] : vector<128x1xf32> to vector<128xf32>
    %76 = vector.shape_cast %75 : vector<128xf32> to vector<128x1xf32>
    %cst_29 = arith.constant 1.000000e+00 : f32
    %77 = vector.broadcast %cst_29 : f32 to vector<128x1xf32>
    %78 = arith.divf %76, %77 : vector<128x1xf32>
    %cst_30 = arith.constant 2.000000e+00 : f32
    %79 = vector.broadcast %cst_30 : f32 to vector<128x1xf32>
    %80 = arith.mulf %79, %61 : vector<128x1xf32>
    %cst_31 = arith.constant 0.000000e+00 : f32
    %81 = vector.broadcast %cst_31 : f32 to vector<128x126xf32>
    %82 = tpu.concatenate %80, %78, %81 in 1 : vector<128x1xf32>, vector<128x1xf32>, vector<128x126xf32> -> vector<128x128xf32>
    %c0_32 = arith.constant 0 : index
    %c0_33 = arith.constant 0 : index
    %83 = vector.load %arg7[%c0_32, %c0_33] : memref<128x128xf32, #tpu.memory_space<vmem>>, vector<128x128xf32>
    tpu.vector_store %arg7[%c0_32, %c0_33], %82 {strides = array<i32>} : memref<128x128xf32, #tpu.memory_space<vmem>>, vector<128x128xf32>,
    return
  }
  func.func @transform_0(%arg0: i32) -> (i32, i32) {
    %c0_i32 = arith.constant 0 : i32
    %c0_i32_0 = arith.constant 0 : i32
    return %arg0, %c0_i32 : i32, i32
  }
  func.func @transform_1(%arg0: i32) -> (i32, i32) {
    %c0_i32 = arith.constant 0 : i32
    %c0_i32_0 = arith.constant 0 : i32
    return %arg0, %c0_i32 : i32, i32
  }
  func.func @transform_2(%arg0: i32) -> (i32, i32) {
    %c0_i32 = arith.constant 0 : i32
    %c0_i32_0 = arith.constant 0 : i32
    %c0_i32_1 = arith.constant 0 : i32
    return %c0_i32, %c0_i32_0 : i32, i32
  }
  func.func @transform_3(%arg0: i32) -> (i32, i32) {
    %c0_i32 = arith.constant 0 : i32
    %c0_i32_0 = arith.constant 0 : i32
    %c0_i32_1 = arith.constant 0 : i32
    return %c0_i32, %c0_i32_0 : i32, i32
  }
  func.func @transform_4(%arg0: i32) -> (i32, i32) {
    %c0_i32 = arith.constant 0 : i32
    %c0_i32_0 = arith.constant 0 : i32
    %c0_i32_1 = arith.constant 0 : i32
    return %c0_i32, %c0_i32_0 : i32, i32
  }
  func.func @transform_5(%arg0: i32) -> (i32, i32) {
    %c0_i32 = arith.constant 0 : i32
    %c0_i32_0 = arith.constant 0 : i32
    %c0_i32_1 = arith.constant 0 : i32
    return %c0_i32, %c0_i32_0 : i32, i32
  }
  func.func @transform_6(%arg0: i32) -> (i32, i32) {
    %c0_i32 = arith.constant 0 : i32
    %c0_i32_0 = arith.constant 0 : i32
    return %arg0, %c0_i32 : i32, i32
  }
}

</mosaic_0001>

<bundles_post_ra>
// kernel: tpu_custom_call.1
= control target key start
LH: loop header
LB: loop body
LE: loop exit
PB: predicated region body
PF: predicated region fallthrough
CT: control target
= control target key end

     0   :  { %11 = vsyncpa [#allocation3], 0  ;;  %s3340_s0 = inlined_call_operand.vmem [shape: f32[256,3], index: 0, kind: input, shape index: {}]   ;;  %s3341_s1 = inlined_call_operand.vmem [shape: f32[256,1], index: 1, kind: input, shape index: {}]   ;;  %s3342_s2 = inlined_call_operand.vmem [shape: f32[3,128], index: 2, kind: input, shape index: {}]   ;;  %s3343_s3 = inlined_call_operand.vmem [shape: bf16[128,128], index: 3, kind: input, shape index: {}]   ;;  %s3344_s4 = inlined_call_operand.vmem [shape: bf16[128,128], index: 4, kind: input, shape index: {}]   ;;  %s3345_s5 = inlined_call_operand.vmem [shape: f32[3,128], index: 5, kind: input, shape index: {}]   ;;  %s3346_s6 = inlined_call_operand.hbm [shape: f32[256,128], index: 6, kind: output, shape index: {}]  }
   0x1   :  { %13 = vsyncpa [#allocation3 + $0x1], 0  ;;  %s2426_s21 = smov 0   ;;  %s2428_s22 = smov 0  }
   0x2   :  { %s2430_s23 = smov 0   ;;  %s2432_s24 = smov 0  }
   0x3 LB: > { %s2447_s25 = sadd.s32 4294967295, %s2381_s24   ;;  %s1934_s26 = sadd.s32 4294967294, %s2381_s24   ;;  %s2381_s24 = sphi %s2432_s24, %s3370_s24   ;;  %s2377_s23 = sphi %s2430_s23, %s3369_s23   ;;  %s2373_s22 = sphi %s2428_s22, %s3368_s22   ;;  %s2369_s21 = sphi %s2426_s21, %s3367_s21  }
   0x4   : > { %s2451_s27 = sadd.s32 1, %s2381_s24   ;;  %s162_s28 = sadd.s32 1, %s2377_s23 }
   0x5   : > { %s159_s29 = ssub.s32 %s2381_s24, %s2451_s27  ;;  %p172_p0 = scmp.ne.s32.totalorder %s2377_s23, %s2373_s22 }
   0x6   : > { %p160_p1 = scmp.eq.s32.totalorder %s159_s29, 0  ;;  %p173_p2 = scmp.eq.s32.totalorder %s2447_s25, 1 }
   0x7   : > { %p178_p3 = scmp.ne.s32.totalorder %s2373_s22, %s2369_s21  ;;  %p179_p4 = scmp.eq.s32.totalorder %s1934_s26, 1 }
   0x8   : > { %s2462_s30 = scalar_select %p160_p1, %s2377_s23, %s162_s28  }
   0x9   : > { %p2464_p5 = por %p173_p2, %p172_p0  ;;  %p2468_p6 = por %p179_p4, %p178_p3 }
   0xa   : > { %p1937_p7 = scmp.ge.s32.totalorder %s2381_s24, 1  ;;  %p227_p8 = scmp.lt.s32.totalorder %s2381_s24, 3 }
   0xc   : > { %p228_p9 = pnand %p1937_p7, %p227_p8 }
   0xd   : > { %s1939_s9 = sshll.u32 (!%p228_p9), %s2447_s25, 4  ;;  %s2386_s20 = smov (!%p228_p9), 127  }
   0xe   : > { %231 = sbr.rel (%p228_p9) target bundleno = 1024 (0x400), region = 44  ;;  %p263_p10 = scmp.lt.s32.totalorder (!%p228_p9), %s1939_s9, 31 }
   0xf   : > { %s1986_s12 = sshll.u32 (!%p228_p9), %s2447_s25, 11  ;;  %s2388_s19 = smov (!%p228_p9), [#allocation2]  }
  0x10   : > { %s3291_s17 = scalar_lea.hbm (!%p228_p9), %s3346_s6, %s1986_s12 }
  0x13   : > { %v2383_v0 = vmov 2   ;;  %v2384_v1 = vmov 0   ;;  %s3372_s9 = smov (!%p263_p10, %s1939_s9), 31  ;;  %v2385_v8 = vmov 1   ;;  %v2145_v10 = vld [vmem:[%s3343_s3 + $0x38] sm:$0xff]   ;;  %v2146_v11 = vld [vmem:[%s3343_s3 + $0x30] sm:$0xff]  }
  0x14   : > { %2132 = vset.pattern.permute.xlu0 %v2383_v0  ;;  %2129 = vset.pattern.permute.xlu1 %v2384_v1  ;;  %s1940_s10 = sshll.u32 %s3372_s9, 3  ;;  %v2147_v13 = vld [vmem:[%s3343_s3 + $0x28] sm:$0xff]   ;;  %v2148_v16 = vld [vmem:[%s3343_s3 + $0x20] sm:$0xff]   ;;  %v2149_v18 = vld [vmem:[%s3343_s3 + $0x18] sm:$0xff]   ;;  %s2387_s9 = smov 1  }
  0x15   : > { %s2485_s13 = scalar_lea.vmem %s3340_s0, %s1940_s10  ;;  %2019 = vmatprep.subr.bf16.mxu0 %v2145_v10  ;;  %v2150_v19 = vld [vmem:[%s3343_s3 + $0x10] sm:$0xff]   ;;  %v2151_v20 = vld [vmem:[%s3343_s3 + $0x8] sm:$0xff]   ;;  %v2152_v21 = vld [vmem:[%s3343_s3] sm:$0xff]   ;;  %s3020_s28 = scalar_lea.vmem %s3341_s1, %s1940_s10 }
  0x16   : > { %v278_v2 = vld [vmem:[%s2485_s13 + $0x10] sm:$0xff]  ;;  %v277_v3 = vld [vmem:[%s2485_s13 + $0x8] sm:$0xff]  ;;  %v279_v4 = vld [vmem:[%s2485_s13 + $0x18] sm:$0xff]  ;;  %2020 = vmatpush3.bf16.msra.mxu0 %v2145_v10  ;;  %s259_s10 = sand.u32 1, %s2373_s22  }
  0x17   : > { %324 = vperm.xlu1 %2129, %v278_v2   ;;  %539 = vperm.xlu0 %2132, %v277_v3   ;;  %v280_v5 = vld [vmem:[%s2485_s13 + $0x20] sm:$0xff]  ;;  %v283_v6 = vld [vmem:[%s2485_s13 + $0x38] sm:$0xff]  ;;  %v2493_v7 = vld [vmem:[%s2485_s13 + $0x48] sm:$0xff]  ;;  %s1938_s29 = sshll.u32 %s259_s10, 7  ;;  %s3300_s25 = scalar_lea.sflag [#allocation3], %s259_s10 }
  0x18   : > { %v276_v9 = vld [vmem:[%s2485_s13] sm:$0xff]  ;;  %v281_v12 = vld [vmem:[%s2485_s13 + $0x28] sm:$0xff]  ;;  %2021 = vmatprep.subr.bf16.mxu0 %v2146_v11  ;;  %v282_v14 = vld [vmem:[%s2485_s13 + $0x30] sm:$0xff]  ;;  %s3226_s11 = scalar_lea.vmem [#allocation2], %s1938_s29 }
  0x19   : > { %v288_v15 = vld [vmem:[%s2485_s13 + $0x60] sm:$0xff]  ;;  %v291_v17 = vld [vmem:[%s2485_s13 + $0x78] sm:$0xff]  ;;  %v286_v24 = vld [vmem:[%s2485_s13 + $0x50] sm:$0xff]  ;;  %s1860_s14 = sshll.u32 %s3226_s11, 4  ;;  %s3293_s14 = int_to_ptr.vmem [resolvable:$true] %s1860_s14 }
  0x1a   : > { %2022 = vmatpush3.bf16.msra.mxu0 %v2146_v11  ;;  %v284_v22 = vld [vmem:[%s2485_s13 + $0x40] sm:$0xff]  ;;  %v287_v23 = vld [vmem:[%s2485_s13 + $0x58] sm:$0xff]  ;;  %v289_v25 = vld [vmem:[%s2485_s13 + $0x68] sm:$0xff]  ;;  %s2321_s18 = scalar_lea.vmem %s3293_s14, 2048 }
  0x1b   : > { %329 = vperm.xlu1 %2129, %v279_v4   ;;  %551 = vperm.xlu0 %2132, %v280_v5   ;;  %v290_v26 = vld [vmem:[%s2485_s13 + $0x70] sm:$0xff]  ;;  %v2153_v31 = vld [vmem:[%s3344_s4 + $0x38] sm:$0xff]   ;;  %v2155_v34 = vld [vmem:[%s3344_s4 + $0x28] sm:$0xff]   ;;  %p2322_p11 = scmp.ne.s32.totalorder %s3293_s14, %s2321_s18 }
  0x1c   : > { %2023 = vmatprep.subr.bf16.mxu0 %v2147_v13  ;;  %v2154_v32 = vld [vmem:[%s3344_s4 + $0x30] sm:$0xff]   ;;  %2051 = vmatprep.subr.bf16.mxu1 %v2153_v31  ;;  %v2156_v37 = vld [vmem:[%s3344_s4 + $0x20] sm:$0xff]   ;;  %v2157_v39 = vld [vmem:[%s3344_s4 + $0x18] sm:$0xff]  }
  0x1d   : > { %2052 = vmatpush3.bf16.msra.mxu1 %v2153_v31  ;;  %v2570_v49 = vld [vmem:[%s3342_s2] ss:$0 sm:$0xff]  ;;  %v2583_v54 = vld [vmem:[%s3342_s2 + $0x1] ss:$0 sm:$0xff]  ;;  %v2594_v61 = vld [vmem:[%s3342_s2 + $0x2] ss:$0 sm:$0xff]  ;;  %p2323_p12 = pnand %p2322_p11, %p2464_p5 }
  0x1e   : > { %2024 = vmatpush3.bf16.msra.mxu0 %v2147_v13  ;;  %2053 = vmatprep.subr.bf16.mxu1 %v2154_v32  ;;  %v2578_v53 = vld [vmem:[%s3345_s5] ss:$0 sm:$0xff] }
  0x1f   : > { %2130 = vset.pattern.permute.xlu1 %v2385_v8  ;;  %563 = vperm.xlu0 %2132, %v283_v6   ;;  %p2324_p13 = pneg %p2323_p12 }
  0x20   : > { %438 = vperm.xlu1 %2130, %v277_v3   ;;  %2025 = vmatprep.subr.bf16.mxu0 %v2148_v16 }
  0x21   : > { %2054 = vmatpush3.bf16.msra.mxu1 %v2154_v32 }
  0x22   : > { %2026 = vmatpush3.bf16.msra.mxu0 %v2148_v16  ;;  %2055 = vmatprep.subr.bf16.mxu1 %v2155_v34 }
  0x23   : > { %571 = vperm.xlu0 %2132, %v2493_v7   ;;  %2027 = vmatprep.subr.bf16.mxu0 %v2149_v18 }
  0x24   : > { %442 = vperm.xlu1 %2130, %v278_v2  }
  0x25   : > { %2056 = vmatpush3.bf16.msra.mxu1 %v2155_v34 }
  0x26   : > { %2028 = vmatpush3.bf16.msra.mxu0 %v2149_v18  ;;  %2057 = vmatprep.subr.bf16.mxu1 %v2156_v37 }
  0x27   : > { %2139 = vset.pattern.permute.xlu0 %v2384_v1  ;;  %2029 = vmatprep.subr.bf16.mxu0 %v2150_v19 }
  0x28   : > { %2131 = vset.pattern.permute.xlu1 %v2383_v0  ;;  %314 = vperm.xlu0 %2139, %v276_v9  }
  0x29   : > { %535 = vperm.xlu1 %2131, %v276_v9   ;;  %2058 = vmatpush3.bf16.msra.mxu1 %v2156_v37 }
  0x2a   : > { %2030 = vmatpush3.bf16.msra.mxu0 %v2150_v19  ;;  %2059 = vmatprep.subr.bf16.mxu1 %v2157_v39 }
  0x2b   : > { %2031 = vmatprep.subr.bf16.mxu0 %v2151_v20 }
  0x2c   : > { %319 = vperm.xlu0 %2139, %v277_v3  }
  0x2d   : > { %543 = vperm.xlu1 %2131, %v278_v2   ;;  %2060 = vmatpush3.bf16.msra.mxu1 %v2157_v39 }
  0x2e   : > { %2032 = vmatpush3.bf16.msra.mxu0 %v2151_v20 }
  0x2f   : > { %2033 = vmatprep.subr.bf16.mxu0 %v2152_v21 }
  0x30   : > { %334 = vperm.xlu0 %2139, %v280_v5  }
  0x31   : > { %547 = vperm.xlu1 %2131, %v279_v4  }
  0x32   : > { %2034 = vmatpush3.bf16.msra.mxu0 %v2152_v21 }
  0x34   : > { %349 = vperm.xlu0 %2139, %v283_v6  }
  0x35   : > { %2133 = vset.pattern.permute.xlu1 %v2384_v1 }
  0x36   : > { %339 = vperm.xlu1 %2133, %v281_v12  }
  0x38   : > { %359 = vperm.xlu0 %2139, %v2493_v7  }
  0x3a   : > { %344 = vperm.xlu1 %2133, %v282_v14  }
  0x3c   : > { %374 = vperm.xlu0 %2139, %v288_v15  }
  0x3e   : > { %2134 = vset.pattern.permute.xlu1 %v2385_v8 }
  0x3f   : > { %450 = vperm.xlu1 %2134, %v280_v5  }
  0x40   : > { %389 = vperm.xlu0 %2139, %v291_v17  }
  0x43   : > { %458 = vperm.xlu1 %2134, %v282_v14  }
  0x44   : > { %2141 = vset.pattern.permute.xlu0 %v2385_v8 }
  0x45   : > { %434 = vperm.xlu0 %2141, %v276_v9  }
  0x47   : > { %462 = vperm.xlu1 %2134, %v283_v6  }
  0x49   : > { %446 = vperm.xlu0 %2141, %v279_v4  }
  0x4b   : > { %2135 = vset.pattern.permute.xlu1 %v2383_v0 }
  0x4c   : > { %555 = vperm.xlu1 %2135, %v281_v12  }
  0x4d   : > { %454 = vperm.xlu0 %2141, %v281_v12  }
  0x50   : > { %559 = vperm.xlu1 %2135, %v282_v14  }
  0x51   : > { %466 = vperm.xlu0 %2141, %v284_v22  }
  0x54   : > { %2136 = vset.pattern.permute.xlu1 %v2384_v1 }
  0x55   : > { %354 = vperm.xlu1 %2136, %v284_v22   ;;  %478 = vperm.xlu0 %2141, %v287_v23  }
  0x59   : > { %364 = vperm.xlu1 %2136, %v286_v24   ;;  %486 = vperm.xlu0 %2141, %v289_v25  }
  0x5d   : > { %369 = vperm.xlu1 %2136, %v287_v23   ;;  %2143 = vset.pattern.permute.xlu0 %v2383_v0 }
  0x5e   : > { %583 = vperm.xlu0 %2143, %v288_v15  }
  0x61   : > { %2137 = vset.pattern.permute.xlu1 %v2385_v8 }
  0x62   : > { %470 = vperm.xlu1 %2137, %v2493_v7   ;;  %595 = vperm.xlu0 %2143, %v291_v17  }
  0x66   : > { %474 = vperm.xlu1 %2137, %v286_v24  }
  0x6a   : > { %2138 = vset.pattern.permute.xlu1 %v2383_v0 }
  0x6b   : > { %567 = vperm.xlu1 %2138, %v284_v22  }
  0x6f   : > { %575 = vperm.xlu1 %2138, %v286_v24  }
  0x73   : > { %579 = vperm.xlu1 %2138, %v287_v23  }
  0x77   : > { %2140 = vset.pattern.permute.xlu1 %v2384_v1 }
  0x78   : > { %379 = vperm.xlu1 %2140, %v289_v25  }
  0x7c   : > { %384 = vperm.xlu1 %2140, %v290_v26  }
  0x80   : > { %2142 = vset.pattern.permute.xlu1 %v2385_v8 }
  0x81   : > { %482 = vperm.xlu1 %2142, %v288_v15  }
  0x85   : > { %490 = vperm.xlu1 %2142, %v290_v26  }
  0x89   : > { %494 = vperm.xlu1 %2142, %v291_v17  }
  0x8d   : > { %2144 = vset.pattern.permute.xlu1 %v2383_v0 }
  0x8e   : > { %587 = vperm.xlu1 %2144, %v289_v25  }
  0x92   : > { %v325_v27 = vpop.permute.xlu1 %324  ;;  %591 = vperm.xlu1 %2144, %v290_v26   ;;  %v540_v28 = vpop.permute.xlu0 %539 }
  0x93   : > { %v398_v60 = vmul.f32 %v2570_v49, %v325_v27  ;;  %v603_v62 = vmul.f32 %v2594_v61, %v540_v28 }
  0x95   : > { %v418_v6 = vadd.f32 %v2578_v53, %v398_v60 }
  0x96   : > { %v330_v29 = vpop.permute.xlu1 %329  ;;  %v552_v30 = vpop.permute.xlu0 %551 }
  0x97   : > { %v399_v4 = vmul.f32 %v2570_v49, %v330_v29  ;;  %v606_v18 = vmul.f32 %v2594_v61, %v552_v30 }
  0x99   : > { %v419_v17 = vadd.f32 %v2578_v53, %v399_v4 }
  0x9a   : > { %v2552_v33 = vpop.permute.xlu0 %563 }
  0x9b   : > { %v439_v35 = vpop.permute.xlu1 %438 }
  0x9c   : > { %v502_v59 = vmul.f32 %v2583_v54, %v439_v35 }
  0x9e   : > { %v2557_v36 = vpop.permute.xlu0 %571 }
  0x9f   : > { %v443_v38 = vpop.permute.xlu1 %442 }
  0xa0   : > { %v503_v2 = vmul.f32 %v2583_v54, %v443_v38 }
  0xa2   : > { %v519_v13 = vadd.f32 %v503_v2, %v418_v6 }
  0xa3   : > { %v315_v40 = vpop.permute.xlu0 %314 }
  0xa4   : > { %v536_v41 = vpop.permute.xlu1 %535  ;;  %v396_v57 = vmul.f32 %v2570_v49, %v315_v40 }
  0xa5   : > { %v602_v14 = vmul.f32 %v2594_v61, %v536_v41 }
  0xa6   : > { %v416_v3 = vadd.f32 %v2578_v53, %v396_v57 }
  0xa7   : > { %v320_v42 = vpop.permute.xlu0 %319 }
  0xa8   : > { %v544_v43 = vpop.permute.xlu1 %543  ;;  %v397_v51 = vmul.f32 %v2570_v49, %v320_v42 }
  0xa9   : > { %v604_v7 = vmul.f32 %v2594_v61, %v544_v43 }
  0xaa   : > { %v417_v55 = vadd.f32 %v2578_v53, %v397_v51 }
  0xab   : > { %v335_v44 = vpop.permute.xlu0 %334  ;;  %v620_v20 = vadd.f32 %v604_v7, %v519_v13 }
  0xac   : > { %v548_v45 = vpop.permute.xlu1 %547  ;;  %v400_v63 = vmul.f32 %v2570_v49, %v335_v44  ;;  %v518_v1 = vadd.f32 %v502_v59, %v417_v55 }
  0xad   : > { %v605_v24 = vmul.f32 %v2594_v61, %v548_v45  ;;  %v636_v41 = vmax.f32 %v620_v20, 0.0 }
  0xae   : > { %v420_v9 = vadd.f32 %v2578_v53, %v400_v63  ;;  %v619_v12 = vadd.f32 %v603_v62, %v518_v1 }
  0xaf   : > { %v350_v46 = vpop.permute.xlu0 %349 }
  0xb0   : > { %v403_v15 = vmul.f32 %v2570_v49, %v350_v46  ;;  %v635_v27 = vmax.f32 %v619_v12, 0.0 }
  0xb1   : > { %v340_v47 = vpop.permute.xlu1 %339 }
  0xb2   : > { %v401_v21 = vmul.f32 %v2570_v49, %v340_v47  ;;  %v423_v28 = vadd.f32 %v2578_v53, %v403_v15 }
  0xb3   : > { %v2565_v48 = vpop.permute.xlu0 %359 }
  0xb4   : > { %v421_v37 = vadd.f32 %v2578_v53, %v401_v21 }
  0xb5   : > { %v345_v50 = vpop.permute.xlu1 %344 }
  0xb6   : > { %v402_v25 = vmul.f32 %v2570_v49, %v345_v50 }
  0xb7   : > { %v2573_v52 = vpop.permute.xlu0 %374 }
  0xb8   : > { %v422_v42 = vadd.f32 %v2578_v53, %v402_v25 }
  0xba   : > { %v451_v56 = vpop.permute.xlu1 %450 }
  0xbb   : > { %v2587_v58 = vpop.permute.xlu0 %389  ;;  %v505_v10 = vmul.f32 %v2583_v54, %v451_v56  ;;  %v609_v56 = vmul.f32 %v2594_v61, %v2552_v33 }
  0xbd   : > { %v521_v26 = vadd.f32 %v505_v10, %v420_v9 }
  0xbe   : > { %v459_v0 = vpop.permute.xlu1 %458 }
  0xbf   : > { %v507_v34 = vmul.f32 %v2583_v54, %v459_v0  ;;  %v622_v43 = vadd.f32 %v606_v18, %v521_v26 }
  0xc0   : > { %v435_v5 = vpop.permute.xlu0 %434 }
  0xc1   : > { %v501_v8 = vmul.f32 %v2583_v54, %v435_v5  ;;  %v523_v51 = vadd.f32 %v507_v34, %v422_v42  ;;  %v638_v62 = vmax.f32 %v622_v43, 0.0 }
  0xc2   : > { %v463_v11 = vpop.permute.xlu1 %462 }
  0xc3   : > { %v517_v16 = vadd.f32 %v501_v8, %v416_v3  ;;  %v508_v29 = vmul.f32 %v2583_v54, %v463_v11  ;;  %v405_v8 = vmul.f32 %v2570_v49, %v2565_v48 }
  0xc4   : > { %v447_v19 = vpop.permute.xlu0 %446 }
  0xc5   : > { %v504_v22 = vmul.f32 %v2583_v54, %v447_v19  ;;  %v618_v23 = vadd.f32 %v602_v14, %v517_v16  ;;  %v524_v44 = vadd.f32 %v508_v29, %v423_v28  ;;  %v425_v12 = vadd.f32 %v2578_v53, %v405_v8 }
  0xc7   : > { %v520_v31 = vadd.f32 %v504_v22, %v419_v17  ;;  %v556_v32 = vpop.permute.xlu1 %555  ;;  %v634_v30 = vmax.f32 %v618_v23, 0.0  ;;  %v625_v63 = vadd.f32 %v609_v56, %v524_v44  ;;  %v611_v17 = vmul.f32 %v2594_v61, %v2557_v36 }
  0xc8   : > { %v455_v35 = vpop.permute.xlu0 %454  ;;  %v607_v46 = vmul.f32 %v2594_v61, %v556_v32 }
  0xc9   : > { %v621_v38 = vadd.f32 %v605_v24, %v520_v31  ;;  %v506_v39 = vmul.f32 %v2583_v54, %v455_v35  ;;  %v650_v40 = vpack.c.bf16 %v635_v27, %v634_v30  ;;  %v641_v4 = vmax.f32 %v625_v63, 0.0 }
  0xcb   : > { %v637_v45 = vmax.f32 %v621_v38, 0.0  ;;  %v522_v47 = vadd.f32 %v506_v39, %v421_v37  ;;  %2035 = vmatprep.mubr.bf16.mxu0 %v650_v40  ;;  %v560_v50 = vpop.permute.xlu1 %559 }
  0xcc   : > { %v608_v55 = vmul.f32 %v2594_v61, %v560_v50  ;;  %v467_v11 = vpop.permute.xlu0 %466  ;;  %v408_v50 = vmul.f32 %v2570_v49, %v2573_v52 }
  0xcd   : > { %v623_v57 = vadd.f32 %v607_v46, %v522_v47  ;;  %v651_v59 = vpack.c.bf16 %v637_v45, %v636_v41  ;;  %v509_v15 = vmul.f32 %v2583_v54, %v467_v11 }
  0xce   : > { %v624_v60 = vadd.f32 %v608_v55, %v523_v51 }
  0xcf   : > { %v639_v0 = vmax.f32 %v623_v57, 0.0  ;;  %2036 = vmatmul.mubr.bf16.vlgmr.msra.gmra.mxu0 %v651_v59  ;;  %v428_v59 = vadd.f32 %v2578_v53, %v408_v50 }
  0xd0   : > { %v355_v1 = vpop.permute.xlu1 %354  ;;  %v640_v2 = vmax.f32 %v624_v60, 0.0  ;;  %v479_v21 = vpop.permute.xlu0 %478  ;;  %v411_v60 = vmul.f32 %v2570_v49, %v2587_v58 }
  0xd1   : > { %v652_v3 = vpack.c.bf16 %v639_v0, %v638_v62  ;;  %v404_v9 = vmul.f32 %v2570_v49, %v355_v1  ;;  %v512_v27 = vmul.f32 %v2583_v54, %v479_v21 }
  0xd2   : > { %v653_v6 = vpack.c.bf16 %v641_v4, %v640_v2 }
  0xd3   : > { %2039 = vmatprep.mubr.bf16.mxu0 %v652_v3  ;;  %v424_v14 = vadd.f32 %v2578_v53, %v404_v9  ;;  %v431_v3 = vadd.f32 %v2578_v53, %v411_v60 }
  0xd4   : > { %v365_v5 = vpop.permute.xlu1 %364  ;;  %v487_v47 = vpop.permute.xlu0 %486 }
  0xd5   : > { %v406_v18 = vmul.f32 %v2570_v49, %v365_v5  ;;  %v525_v19 = vadd.f32 %v509_v15, %v424_v14  ;;  %v514_v4 = vmul.f32 %v2583_v54, %v487_v47 }
  0xd7   : > { %2040 = vmatmul.mubr.bf16.gmra.mxu0 %v653_v6  ;;  %v426_v26 = vadd.f32 %v2578_v53, %v406_v18  ;;  %v2158_v18 = vld [vmem:[%s3344_s4 + $0x10] sm:$0xff]  }
  0xd8   : > { %v370_v7 = vpop.permute.xlu1 %369  ;;  %2061 = vmatprep.subr.bf16.mxu1 %v2158_v18 }
  0xd9   : > { %v407_v20 = vmul.f32 %v2570_v49, %v370_v7  ;;  %v584_v57 = vpop.permute.xlu0 %583  ;;  %2062 = vmatpush3.bf16.msra.mxu1 %v2158_v18 }
  0xda   : > { %v614_v0 = vmul.f32 %v2594_v61, %v584_v57 }
  0xdb   : > { %v427_v36 = vadd.f32 %v2578_v53, %v407_v20 }
  0xdd   : > { %v471_v33 = vpop.permute.xlu1 %470  ;;  %v528_v37 = vadd.f32 %v512_v27, %v427_v36  ;;  %v596_v52 = vpop.permute.xlu0 %595 }
  0xde   : > { %v510_v10 = vmul.f32 %v2583_v54, %v471_v33  ;;  %v617_v7 = vmul.f32 %v2594_v61, %v596_v52 }
  0xe0   : > { %v526_v16 = vadd.f32 %v510_v10, %v425_v12 }
  0xe1   : > { %v475_v13 = vpop.permute.xlu1 %474 }
  0xe2   : > { %v627_v22 = vadd.f32 %v611_v17, %v526_v16  ;;  %v511_v24 = vmul.f32 %v2583_v54, %v475_v13 }
  0xe4   : > { %v643_v29 = vmax.f32 %v627_v22, 0.0  ;;  %v527_v30 = vadd.f32 %v511_v24, %v426_v26  ;;  %v1947_v24 = vld [vmem:[%s3345_s5 + $0x1] ss:$0 sm:$0xff] }
  0xe6   : > { %v568_v48 = vpop.permute.xlu1 %567 }
  0xe7   : > { %v610_v23 = vmul.f32 %v2594_v61, %v568_v48 }
  0xe9   : > { %v626_v25 = vadd.f32 %v610_v23, %v525_v19 }
  0xea   : > { %v576_v28 = vpop.permute.xlu1 %575 }
  0xeb   : > { %v642_v31 = vmax.f32 %v626_v25, 0.0  ;;  %v612_v32 = vmul.f32 %v2594_v61, %v576_v28 }
  0xed   : > { %v654_v34 = vpack.c.bf16 %v643_v29, %v642_v31  ;;  %v628_v38 = vadd.f32 %v612_v32, %v527_v30 }
  0xee   : > { %v580_v35 = vpop.permute.xlu1 %579 }
  0xef   : > { %v613_v39 = vmul.f32 %v2594_v61, %v580_v35  ;;  %2043 = vmatprep.mubr.bf16.mxu0 %v654_v34  ;;  %v644_v41 = vmax.f32 %v628_v38, 0.0 }
  0xf1   : > { %v629_v40 = vadd.f32 %v613_v39, %v528_v37 }
  0xf3   : > { %v645_v42 = vmax.f32 %v629_v40, 0.0  ;;  %v380_v43 = vpop.permute.xlu1 %379 }
  0xf4   : > { %v409_v56 = vmul.f32 %v2570_v49, %v380_v43 }
  0xf5   : > { %v655_v44 = vpack.c.bf16 %v645_v42, %v644_v41 }
  0xf6   : > { %v429_v1 = vadd.f32 %v2578_v53, %v409_v56 }
  0xf7   : > { %2044 = vmatmul.mubr.bf16.gmra.mxu0 %v655_v44  ;;  %v385_v45 = vpop.permute.xlu1 %384 }
  0xf8   : > { %v410_v5 = vmul.f32 %v2570_v49, %v385_v45  ;;  %v530_v9 = vadd.f32 %v514_v4, %v429_v1 }
  0xfa   : > { %v430_v11 = vadd.f32 %v2578_v53, %v410_v5  ;;  %v2159_v53 = vld [vmem:[%s3344_s4 + $0x8] sm:$0xff]  }
  0xfb   : > { %2063 = vmatprep.subr.bf16.mxu1 %v2159_v53 }
  0xfc   : > { %v483_v46 = vpop.permute.xlu1 %482  ;;  %2064 = vmatpush3.bf16.msra.mxu1 %v2159_v53 }
  0xfd   : > { %v513_v55 = vmul.f32 %v2583_v54, %v483_v46 }
  0xff   : > { %v529_v63 = vadd.f32 %v513_v55, %v428_v59 }
 0x100   : > { %v491_v51 = vpop.permute.xlu1 %490 }
 0x101   : > { %v630_v6 = vadd.f32 %v614_v0, %v529_v63  ;;  %v515_v58 = vmul.f32 %v2583_v54, %v491_v51 }
 0x103   : > { %v646_v13 = vmax.f32 %v630_v6, 0.0  ;;  %v531_v15 = vadd.f32 %v515_v58, %v430_v11 }
 0x104   : > { %v495_v62 = vpop.permute.xlu1 %494 }
 0x105   : > { %v516_v2 = vmul.f32 %v2583_v54, %v495_v62 }
 0x107   : > { %v532_v33 = vadd.f32 %v516_v2, %v431_v3 }
 0x109   : > { %v588_v8 = vpop.permute.xlu1 %587  ;;  %v633_v16 = vadd.f32 %v617_v7, %v532_v33 }
 0x10a   : > { %v615_v10 = vmul.f32 %v2594_v61, %v588_v8 }
 0x10b   : > { %v649_v19 = vmax.f32 %v633_v16, 0.0 }
 0x10c   : > { %v631_v12 = vadd.f32 %v615_v10, %v530_v9 }
 0x10d   : > { %v592_v14 = vpop.permute.xlu1 %591 }
 0x10e   : > { %v647_v17 = vmax.f32 %v631_v12, 0.0  ;;  %v616_v49 = vmul.f32 %v2594_v61, %v592_v14  ;;  %v2160_v61 = vld [vmem:[%s3344_s4] sm:$0xff]  }
 0x10f   : > { %2065 = vmatprep.subr.bf16.mxu1 %v2160_v61 }
 0x110   : > { %v632_v48 = vadd.f32 %v616_v49, %v531_v15  ;;  %v656_v54 = vpack.c.bf16 %v647_v17, %v646_v13  ;;  %2066 = vmatpush3.bf16.msra.mxu1 %v2160_v61 }
 0x112   : > { %v648_v20 = vmax.f32 %v632_v48, 0.0  ;;  %2047 = vmatprep.mubr.bf16.mxu0 %v656_v54  ;;  %v2675_v48 = vld [vmem:[%s3345_s5 + $0x2] ss:$0 sm:$0xff] }
 0x114   : > { %v657_v21 = vpack.c.bf16 %v649_v19, %v648_v20 }
 0x116   : > { %2048 = vmatmul.mubr.bf16.gmra.mxu0 %v657_v21 }
 0x18f   : > { %v2037_v22 = vpop.f32.mrf.mxu0 }
 0x190   : > { %v769_v28 = vadd.f32 %v2037_v22, %v1947_v24 }
 0x191   : > { %v760_v23 = vpop.f32.mrf.mxu0 }
 0x192   : > { %v761_v26 = vadd.f32 %v1947_v24, %v760_v23  ;;  %v825_v35 = vmax.f32 %v769_v28, 0.0 }
 0x193   : > { %v2038_v25 = vpop.f32.mrf.mxu0 }
 0x194   : > { %v772_v27 = vadd.f32 %v2038_v25, %v1947_v24  ;;  %v823_v30 = vmax.f32 %v761_v26, 0.0 }
 0x195   : > { %v763_v36 = vpop.f32.mrf.mxu0 }
 0x196   : > { %v764_v29 = vadd.f32 %v1947_v24, %v763_v36  ;;  %v826_v31 = vmax.f32 %v772_v27, 0.0 }
 0x197   : > { %v2041_v32 = vpop.f32.mrf.mxu0 }
 0x198   : > { %v824_v34 = vmax.f32 %v764_v29, 0.0  ;;  %v840_v39 = vpack.c.bf16 %v826_v31, %v825_v35  ;;  %v785_v43 = vadd.f32 %v2041_v32, %v1947_v24 }
 0x199   : > { %v776_v37 = vpop.f32.mrf.mxu0 }
 0x19a   : > { %v839_v38 = vpack.c.bf16 %v824_v34, %v823_v30  ;;  %v777_v41 = vadd.f32 %v1947_v24, %v776_v37  ;;  %v829_v51 = vmax.f32 %v785_v43, 0.0 }
 0x19b   : > { %v2042_v40 = vpop.f32.mrf.mxu0 }
 0x19c   : > { %v788_v42 = vadd.f32 %v2042_v40, %v1947_v24  ;;  %2067 = vmatprep.mubr.bf16.mxu1 %v839_v38  ;;  %v827_v47 = vmax.f32 %v777_v41, 0.0 }
 0x19d   : > { %v779_v44 = vpop.f32.mrf.mxu0  ;;  %2068 = vmatmul.mubr.bf16.vlgmr.msra.gmra.mxu1 %v840_v39 }
 0x19e   : > { %v780_v45 = vadd.f32 %v1947_v24, %v779_v44  ;;  %v830_v46 = vmax.f32 %v788_v42, 0.0 }
 0x1a0   : > { %v828_v50 = vmax.f32 %v780_v45, 0.0  ;;  %v842_v56 = vpack.c.bf16 %v830_v46, %v829_v51 }
 0x1a2   : > { %v841_v55 = vpack.c.bf16 %v828_v50, %v827_v47 }
 0x1a4   : > { %2071 = vmatprep.mubr.bf16.mxu1 %v841_v55 }
 0x1a5   : > { %2072 = vmatmul.mubr.bf16.gmra.mxu1 %v842_v56 }
 0x1b7   : > { %v2045_v57 = vpop.f32.mrf.mxu0 }
 0x1b8   : > { %v801_v0 = vadd.f32 %v2045_v57, %v1947_v24 }
 0x1b9   : > { %v792_v59 = vpop.f32.mrf.mxu0 }
 0x1ba   : > { %v793_v62 = vadd.f32 %v1947_v24, %v792_v59  ;;  %v833_v5 = vmax.f32 %v801_v0, 0.0 }
 0x1bb   : > { %v2046_v60 = vpop.f32.mrf.mxu0 }
 0x1bc   : > { %v804_v63 = vadd.f32 %v2046_v60, %v1947_v24  ;;  %v831_v3 = vmax.f32 %v793_v62, 0.0 }
 0x1bd   : > { %v795_v1 = vpop.f32.mrf.mxu0 }
 0x1be   : > { %v796_v2 = vadd.f32 %v1947_v24, %v795_v1  ;;  %v834_v52 = vmax.f32 %v804_v63, 0.0 }
 0x1c0   : > { %v832_v4 = vmax.f32 %v796_v2, 0.0  ;;  %v844_v7 = vpack.c.bf16 %v834_v52, %v833_v5 }
 0x1c2   : > { %v843_v6 = vpack.c.bf16 %v832_v4, %v831_v3 }
 0x1c4   : > { %2075 = vmatprep.mubr.bf16.mxu1 %v843_v6 }
 0x1c5   : > { %2076 = vmatmul.mubr.bf16.gmra.mxu1 %v844_v7 }
 0x1d6   : > { %v2049_v8 = vpop.f32.mrf.mxu0 }
 0x1d7   : > { %v817_v11 = vadd.f32 %v2049_v8, %v1947_v24 }
 0x1d8   : > { %v808_v58 = vpop.f32.mrf.mxu0 }
 0x1d9   : > { %v809_v9 = vadd.f32 %v1947_v24, %v808_v58  ;;  %v837_v17 = vmax.f32 %v817_v11, 0.0 }
 0x1da   : > { %v2050_v33 = vpop.f32.mrf.mxu0 }
 0x1db   : > { %v820_v10 = vadd.f32 %v2050_v33, %v1947_v24  ;;  %v835_v15 = vmax.f32 %v809_v9, 0.0 }
 0x1dc   : > { %v811_v12 = vpop.f32.mrf.mxu0 }
 0x1dd   : > { %v812_v13 = vadd.f32 %v1947_v24, %v811_v12  ;;  %v838_v14 = vmax.f32 %v820_v10, 0.0 }
 0x1df   : > { %v836_v16 = vmax.f32 %v812_v13, 0.0  ;;  %v846_v18 = vpack.c.bf16 %v838_v14, %v837_v17 }
 0x1e1   : > { %v845_v49 = vpack.c.bf16 %v836_v16, %v835_v15 }
 0x1e3   : > { %2079 = vmatprep.mubr.bf16.mxu1 %v845_v49 }
 0x1e4   : > { %2080 = vmatmul.mubr.bf16.gmra.mxu1 %v846_v18 }
 0x25d   : > { %v2069_v54 = vpop.f32.mrf.mxu1 }
 0x25e   : > { %v2678_v19 = vadd.f32 %v2069_v54, %v2675_v48 }
 0x25f   : > { %v949_v20 = vpop.f32.mrf.mxu1 }
 0x260   : > { %v1062_v53 = vand.u32 2147483647, %v2678_v19  ;;  %v2682_v21 = vadd.f32 %v2675_v48, %v949_v20  ;;  %v1014_v8 = vmax.f32 %v2678_v19, 0.0  ;;  %vm1030_vm0 = vcmp.ne.f32.partialorder %v2678_v19, %v2678_v19 }
 0x261   : > { %v2070_v61 = vpop.f32.mrf.mxu1 }
 0x262   : > { %v1078_v22 = vsub.f32 0.0, %v1062_v53  ;;  %v1060_v23 = vand.u32 2147483647, %v2682_v21  ;;  %v2686_v24 = vadd.f32 %v2070_v61, %v2675_v48  ;;  %v1012_v58 = vmax.f32 %v2682_v21, 0.0 }
 0x263   : > { %v952_v25 = vpop.f32.mrf.mxu1  ;;  %vm1028_vm4 = vcmp.ne.f32.partialorder %v2682_v21, %v2682_v21 }
 0x264   : > { %v1096_v26 = vmul.f32 1.442695, %v1078_v22  ;;  %v1076_v27 = vsub.f32 0.0, %v1060_v23  ;;  %v1063_v28 = vand.u32 2147483647, %v2686_v24  ;;  %v2690_v36 = vadd.f32 %v2675_v48, %v952_v25 }
 0x265   : > { %v2073_v29 = vpop.f32.mrf.mxu1  ;;  %v1015_v9 = vmax.f32 %v2686_v24, 0.0  ;;  %vm1031_vm6 = vcmp.ne.f32.partialorder %v2686_v24, %v2686_v24 }
 0x266   : > { %2161 = vpow2.f32 %v1096_v26  ;;  %v1092_v31 = vmul.f32 1.442695, %v1076_v27  ;;  %v1079_v32 = vsub.f32 0.0, %v1063_v28  ;;  %v1061_v30 = vand.u32 2147483647, %v2690_v36 }
 0x267   : > { %v2694_v34 = vadd.f32 %v2073_v29, %v2675_v48  ;;  %v965_v35 = vpop.f32.mrf.mxu1  ;;  %v1013_v15 = vmax.f32 %v2690_v36, 0.0  ;;  %vm1029_vm7 = vcmp.ne.f32.partialorder %v2690_v36, %v2690_v36 }
 0x268   : > { %2163 = vpow2.f32 %v1092_v31  ;;  %v1098_v37 = vmul.f32 1.442695, %v1079_v32  ;;  %v1077_v38 = vsub.f32 0.0, %v1061_v30  ;;  %v2697_v39 = vadd.f32 %v2675_v48, %v965_v35 }
 0x269   : > { %v1066_v40 = vand.u32 2147483647, %v2694_v34  ;;  %v2074_v41 = vpop.f32.mrf.mxu1  ;;  %v1018_v18 = vmax.f32 %v2694_v34, 0.0  ;;  %vm1034_vm10 = vcmp.ne.f32.partialorder %v2694_v34, %v2694_v34 }
 0x26a   : > { %2165 = vpow2.f32 %v1098_v37  ;;  %v1094_v42 = vmul.f32 1.442695, %v1077_v38  ;;  %v1064_v43 = vand.u32 2147483647, %v2697_v39  ;;  %v2702_v44 = vadd.f32 %v2074_v41, %v2675_v48 }
 0x26b   : > { %v1082_v45 = vsub.f32 0.0, %v1066_v40  ;;  %v968_v46 = vpop.f32.mrf.mxu1  ;;  %v1016_v54 = vmax.f32 %v2697_v39, 0.0  ;;  %vm1032_vm14 = vcmp.ne.f32.partialorder %v2697_v39, %v2697_v39 }
 0x26c   : > { %2167 = vpow2.f32 %v1094_v42  ;;  %v1080_v47 = vsub.f32 0.0, %v1064_v43  ;;  %v1067_v50 = vand.u32 2147483647, %v2702_v44  ;;  %v2706_v51 = vadd.f32 %v2675_v48, %v968_v46 }
 0x26d   : > { %v1104_v55 = vmul.f32 1.442695, %v1082_v45  ;;  %v1019_v22 = vmax.f32 %v2702_v44, 0.0  ;;  %vm1035_vm11 = vcmp.ne.f32.partialorder %v2702_v44, %v2702_v44 }
 0x26e   : > { %v1100_v56 = vmul.f32 1.442695, %v1080_v47  ;;  %v1083_v57 = vsub.f32 0.0, %v1067_v50  ;;  %v1065_v59 = vand.u32 2147483647, %v2706_v51  ;;  %v1017_v28 = vmax.f32 %v2706_v51, 0.0 }
 0x26f   : > { %2169 = vpow2.f32 %v1104_v55  ;;  %vm1033_vm15 = vcmp.ne.f32.partialorder %v2706_v51, %v2706_v51 }
 0x270   : > { %2171 = vpow2.f32 %v1100_v56  ;;  %v1106_v60 = vmul.f32 1.442695, %v1083_v57  ;;  %v1081_v62 = vsub.f32 0.0, %v1065_v59 }
 0x272   : > { %2173 = vpow2.f32 %v1106_v60  ;;  %v1102_v63 = vmul.f32 1.442695, %v1081_v62 }
 0x273   : > { %v2162_v0 = vpop.eup %2161 }
 0x274   : > { %2175 = vpow2.f32 %v1102_v63  ;;  %v1142_v1 = vadd.f32 1.0, %v2162_v0  ;;  %v1145_v6 = vmul.f32 -0.5, %v2162_v0  ;;  %v1148_v14 = vand.u32 2147483647, %v2162_v0 }
 0x275   : > { %v2164_v2 = vpop.eup %2163 }
 0x276   : > { %2177 = vlog2.f32 %v1142_v1  ;;  %v1124_v52 = vadd.f32 1.0, %v2164_v2  ;;  %v1127_v11 = vmul.f32 -0.5, %v2164_v2  ;;  %v1146_v13 = vadd.f32 1.0, %v1145_v6 }
 0x277   : > { %v2166_v3 = vpop.eup %2165  ;;  %v1130_v17 = vand.u32 2147483647, %v2164_v2  ;;  %vm2731_vm1 = vcmp.lt.f32.partialorder %v1148_v14, 0.0004427343 }
 0x278   : > { %v1151_v4 = vadd.f32 1.0, %v2166_v3  ;;  %2179 = vlog2.f32 %v1124_v52  ;;  %v1154_v10 = vmul.f32 -0.5, %v2166_v3  ;;  %v1157_v53 = vand.u32 2147483647, %v2166_v3 }
 0x279   : > { %v2168_v5 = vpop.eup %2167  ;;  %v1128_v26 = vadd.f32 1.0, %v1127_v11  ;;  %v1147_v31 = vmul.f32 %v2162_v0, %v1146_v13  ;;  %vm2735_vm2 = vcmp.lt.f32.partialorder %v1130_v17, 0.0004427343 }
 0x27a   : > { %2181 = vlog2.f32 %v1151_v4  ;;  %v1133_v7 = vadd.f32 1.0, %v2168_v5  ;;  %v1136_v49 = vmul.f32 -0.5, %v2168_v5  ;;  %v1155_v25 = vadd.f32 1.0, %v1154_v10 }
 0x27b   : > { %v1139_v30 = vand.u32 2147483647, %v2168_v5  ;;  %vm2740_vm3 = vcmp.lt.f32.partialorder %v1157_v53, 0.0004427343  ;;  %v1129_v47 = vmul.f32 %v2164_v2, %v1128_v26 }
 0x27c   : > { %v2711_v33 = vpop.eup %2169  ;;  %2183 = vlog2.f32 %v1133_v7  ;;  %v1137_v37 = vadd.f32 1.0, %v1136_v49  ;;  %v1156_v46 = vmul.f32 %v2166_v3, %v1155_v25 }
 0x27d   : > { %v2714_v12 = vpop.eup %2171  ;;  %v1178_v16 = vadd.f32 1.0, %v2711_v33  ;;  %v1181_v61 = vmul.f32 -0.5, %v2711_v33  ;;  %vm2748_vm5 = vcmp.lt.f32.partialorder %v1139_v30, 0.0004427343  ;;  %v1184_v57 = vand.u32 2147483647, %v2711_v33 }
 0x27e   : > { %v1160_v23 = vadd.f32 1.0, %v2714_v12  ;;  %v1163_v50 = vmul.f32 -0.5, %v2714_v12  ;;  %v1166_v59 = vand.u32 2147483647, %v2714_v12  ;;  %v1138_v0 = vmul.f32 %v2168_v5, %v1137_v37 }
 0x27f   : > { %v2720_v20 = vpop.eup %2173  ;;  %2185 = vlog2.f32 %v1178_v16  ;;  %v1182_v42 = vadd.f32 1.0, %v1181_v61  ;;  %vm2783_vm8 = vcmp.lt.f32.partialorder %v1184_v57, 0.0004427343 }
 0x280   : > { %v1187_v27 = vadd.f32 1.0, %v2720_v20  ;;  %v1190_v43 = vmul.f32 -0.5, %v2720_v20  ;;  %v1193_v1 = vand.u32 2147483647, %v2720_v20  ;;  %v1164_v5 = vadd.f32 1.0, %v1163_v50 }
 0x281   : > { %v2729_v29 = vpop.eup %2175  ;;  %v2763_v6 = vmul.f32 %v2711_v33, %v1182_v42  ;;  %vm1167_vm12 = vcmp.lt.f32.partialorder %v1166_v59, 0.0004427343 }
 0x282   : > { %2187 = vlog2.f32 %v1187_v27  ;;  %v1169_v38 = vadd.f32 1.0, %v2729_v29  ;;  %v1191_v7 = vadd.f32 1.0, %v1190_v43  ;;  %v1172_v17 = vmul.f32 -0.5, %v2729_v29 }
 0x283   : > { %v2178_v40 = vpop.eup %2177  ;;  %2189 = vlog2.f32 %v1160_v23  ;;  %v1175_v49 = vand.u32 2147483647, %v2729_v29  ;;  %vm2787_vm9 = vcmp.lt.f32.partialorder %v1193_v1, 0.0004427343 }
 0x284   : > { %v1144_v45 = vmul.f32 0.6931472, %v2178_v40  ;;  %2191 = vlog2.f32 %v1169_v38  ;;  %v1192_v37 = vmul.f32 %v2720_v20, %v1191_v7 }
 0x285   : > { %v2077_v55 = vpop.f32.mrf.mxu1  ;;  %v2180_v60 = vpop.eup %2179  ;;  %vm1176_vm13 = vcmp.lt.f32.partialorder %v1175_v49, 0.0004427343 }
 0x286   : > { %v2755_v62 = vadd.f32 %v2077_v55, %v2675_v48  ;;  %v1150_v63 = vsel %vm2731_vm1, %v1147_v31, %v1144_v45  ;;  %v1126_v4 = vmul.f32 0.6931472, %v2180_v60 }
 0x287   : > { %v2182_v2 = vpop.eup %2181  ;;  %v981_v52 = vpop.f32.mrf.mxu1  ;;  %v1270_v3 = vadd.f32 %v1150_v63, %v1014_v8  ;;  %v1173_v63 = vadd.f32 1.0, %v1172_v17 }
 0x288   : > { %v1070_v10 = vand.u32 2147483647, %v2755_v62  ;;  %v2767_v11 = vadd.f32 %v2675_v48, %v981_v52  ;;  %v1153_v13 = vmul.f32 0.6931472, %v2182_v2  ;;  %v1132_v33 = vsel %vm2735_vm2, %v1129_v47, %v1126_v4 }
 0x289   : > { %v2184_v14 = vpop.eup %2183  ;;  %v2078_v16 = vpop.f32.mrf.mxu1  ;;  %v1286_v8 = vsel %vm1030_vm0, %v2678_v19, %v1270_v3  ;;  %v1268_v30 = vadd.f32 %v1132_v33, %v1012_v58  ;;  %v1174_v27 = vmul.f32 %v2729_v29, %v1173_v63  ;;  %vm1038_vm0 = vcmp.ne.f32.partialorder %v2755_v62, %v2755_v62 }
 0x28a   : > { %v1086_v53 = vsub.f32 0.0, %v1070_v10  ;;  %v1068_v61 = vand.u32 2147483647, %v2767_v11  ;;  %v2781_v23 = vadd.f32 %v2078_v16, %v2675_v48  ;;  %v1302_v25 = vmax.f32 %v1286_v8, 2.0611537e-09 }
 0x28b   : > { %v984_v31 = vpop.f32.mrf.mxu1  ;;  %v1159_v32 = vsel %vm2740_vm3, %v1156_v46, %v1153_v13  ;;  %v1135_v35 = vmul.f32 0.6931472, %v2184_v14  ;;  %v1284_v58 = vsel %vm1028_vm4, %v2682_v21, %v1268_v30 }
 0x28c   : > { %v1112_v38 = vmul.f32 1.442695, %v1086_v53  ;;  %v1084_v40 = vsub.f32 0.0, %v1068_v61  ;;  %v1071_v42 = vand.u32 2147483647, %v2781_v23  ;;  %v2798_v43 = vadd.f32 %v2675_v48, %v984_v31  ;;  %v2186_v41 = vpop.eup %2185 }
 0x28d   : > { %v2800_v45 = vmin.f32 %v1302_v25, 7.389056  ;;  %v1271_v47 = vadd.f32 %v1159_v32, %v1015_v9  ;;  %v1141_v20 = vsel %vm2748_vm5, %v1138_v0, %v1135_v35  ;;  %v1300_v57 = vmax.f32 %v1284_v58, 2.0611537e-09 }
 0x28e   : > { %2193 = vpow2.f32 %v1112_v38  ;;  %v1108_v46 = vmul.f32 1.442695, %v1084_v40  ;;  %v1087_v50 = vsub.f32 0.0, %v1071_v42  ;;  %v1069_v9 = vand.u32 2147483647, %v2798_v43 }
 0x28f   : > { %v2188_v55 = vpop.eup %2187  ;;  %1384 = vrot.lane.b32.xlu1 %v2800_v45, %s2386_s20  ;;  %v1287_v56 = vsel %vm1031_vm6, %v2686_v24, %v1271_v47  ;;  %v1269_v60 = vadd.f32 %v1141_v20, %v1013_v15  ;;  %v2823_v3 = vmin.f32 %v1300_v57, 7.389056  ;;  %v1180_v7 = vmul.f32 0.6931472, %v2186_v41 }
 0x290   : > { %v2190_v0 = vpop.eup %2189  ;;  %2195 = vpow2.f32 %v1108_v46  ;;  %v1114_v1 = vmul.f32 1.442695, %v1087_v50  ;;  %v1085_v2 = vsub.f32 0.0, %v1069_v9  ;;  %v1303_v52 = vmax.f32 %v1287_v56, 2.0611537e-09 }
 0x291   : > { %v1285_v4 = vsel %vm1029_vm7, %v2690_v36, %v1269_v60  ;;  %v1189_v10 = vmul.f32 0.6931472, %v2188_v55  ;;  %v2192_v13 = vpop.eup %2191  ;;  %v1186_v8 = vsel %vm2783_vm8, %v2763_v6, %v1180_v7  ;;  %v1162_v17 = vmul.f32 0.6931472, %v2190_v0 }
 0x292   : > { %2197 = vpow2.f32 %v1114_v1  ;;  %v1110_v14 = vmul.f32 1.442695, %v1085_v2  ;;  %v2829_v16 = vmin.f32 %v1303_v52, 7.389056  ;;  %v1301_v15 = vmax.f32 %v1285_v4, 2.0611537e-09 }
 0x293   : > { %1380 = vrot.lane.b32.xlu1 %v2823_v3, %s2386_s20  ;;  %v1195_v33 = vsel %vm2787_vm9, %v1192_v37, %v1189_v10  ;;  %v1165_v53 = vmul.f32 %v2714_v12, %v1164_v5  ;;  %v1274_v61 = vadd.f32 %v1186_v8, %v1018_v18  ;;  %v1171_v26 = vmul.f32 0.6931472, %v2192_v13 }
 0x294   : > { %2199 = vpow2.f32 %v1110_v14  ;;  %1386 = vrot.lane.b32.xlu0 %v2829_v16, %s2386_s20  ;;  %v1275_v25 = vadd.f32 %v1195_v33, %v1019_v22  ;;  %v2848_v31 = vmin.f32 %v1301_v15, 7.389056  ;;  %v1022_v52 = vmax.f32 %v2755_v62, 0.0 }
 0x295   : > { %v1168_v6 = vsel %vm1167_vm12, %v1165_v53, %v1162_v17  ;;  %v1290_v5 = vsel %vm1034_vm10, %v2694_v34, %v1274_v61  ;;  %v1177_v29 = vsel %vm1176_vm13, %v1174_v27, %v1171_v26  ;;  %v1020_v4 = vmax.f32 %v2767_v11, 0.0 }
 0x296   : > { %v1291_v18 = vsel %vm1035_vm11, %v2702_v44, %v1275_v25  ;;  %v1272_v12 = vadd.f32 %v1168_v6, %v1016_v54  ;;  %v1306_v22 = vmax.f32 %v1290_v5, 2.0611537e-09  ;;  %v1273_v32 = vadd.f32 %v1177_v29, %v1017_v28 }
 0x297   : > { %v1307_v59 = vmax.f32 %v1291_v18, 2.0611537e-09  ;;  %v1023_v10 = vmax.f32 %v2781_v23, 0.0  ;;  %v1021_v53 = vmax.f32 %v2798_v43, 0.0  ;;  %vm1039_vm5 = vcmp.ne.f32.partialorder %v2781_v23, %v2781_v23 }
 0x298   : > { %1382 = vrot.lane.b32.xlu0 %v2848_v31, %s2386_s20  ;;  %v1288_v49 = vsel %vm1032_vm14, %v2697_v39, %v1272_v12  ;;  %v2867_v30 = vmin.f32 %v1306_v22, 7.389056  ;;  %v1289_v54 = vsel %vm1033_vm15, %v2706_v51, %v1273_v32  ;;  %vm1036_vm6 = vcmp.ne.f32.partialorder %v2767_v11, %v2767_v11 }
 0x299   : > { %v2869_v35 = vmin.f32 %v1307_v59, 7.389056  ;;  %v1304_v37 = vmax.f32 %v1288_v49, 2.0611537e-09  ;;  %v1305_v40 = vmax.f32 %v1289_v54, 2.0611537e-09  ;;  %vm1037_vm7 = vcmp.ne.f32.partialorder %v2798_v43, %v2798_v43 }
 0x29a   : > { %1392 = vrot.lane.b32.xlu1 %v2867_v30, %s2386_s20 }
 0x29b   : > { %v2194_v38 = vpop.eup %2193  ;;  %v2880_v47 = vmin.f32 %v1304_v37, 7.389056  ;;  %v2882_v58 = vmin.f32 %v1305_v40, 7.389056 }
 0x29c   : > { %1394 = vrot.lane.b32.xlu0 %v2869_v35, %s2386_s20  ;;  %v1214_v42 = vadd.f32 1.0, %v2194_v38  ;;  %v1217_v9 = vmul.f32 -0.5, %v2194_v38  ;;  %v1220_v0 = vand.u32 2147483647, %v2194_v38 }
 0x29d   : > { %v2878_v28 = vpop.eup %2195 }
 0x29e   : > { %2201 = vlog2.f32 %v1214_v42  ;;  %v1196_v20 = vadd.f32 1.0, %v2878_v28  ;;  %1388 = vrot.lane.b32.xlu1 %v2880_v47, %s2386_s20  ;;  %v1218_v63 = vadd.f32 1.0, %v1217_v9  ;;  %v1199_v14 = vmul.f32 -0.5, %v2878_v28 }
 0x29f   : > { %v2198_v41 = vpop.eup %2197  ;;  %vm2911_vm1 = vcmp.lt.f32.partialorder %v1220_v0, 0.0004427343  ;;  %v1202_v27 = vand.u32 2147483647, %v2878_v28 }
 0x2a0   : > { %1390 = vrot.lane.b32.xlu0 %v2882_v58, %s2386_s20  ;;  %v1223_v46 = vadd.f32 1.0, %v2198_v41  ;;  %2203 = vlog2.f32 %v1196_v20  ;;  %v1226_v13 = vmul.f32 -0.5, %v2198_v41  ;;  %v1219_v25 = vmul.f32 %v2194_v38, %v1218_v63 }
 0x2a1   : > { %v2889_v50 = vpop.eup %2199  ;;  %v1229_v26 = vand.u32 2147483647, %v2198_v41  ;;  %v1200_v32 = vadd.f32 1.0, %v1199_v14  ;;  %vm2927_vm3 = vcmp.lt.f32.partialorder %v1202_v27, 0.0004427343 }
 0x2a2   : > { %2205 = vlog2.f32 %v1223_v46  ;;  %v1205_v55 = vadd.f32 1.0, %v2889_v50  ;;  %v1208_v15 = vmul.f32 -0.5, %v2889_v50  ;;  %v1227_v49 = vadd.f32 1.0, %v1226_v13 }
 0x2a3   : > { %vm2923_vm2 = vcmp.lt.f32.partialorder %v1229_v26, 0.0004427343  ;;  %v1211_v9 = vand.u32 2147483647, %v2889_v50  ;;  %v1201_v13 = vmul.f32 %v2878_v28, %v1200_v32 }
 0x2a4   : > { %v2081_v56 = vpop.f32.mrf.mxu1  ;;  %2207 = vlog2.f32 %v1205_v55  ;;  %v1209_v37 = vadd.f32 1.0, %v1208_v15 }
 0x2a5   : > { %v2893_v57 = vadd.f32 %v2081_v56, %v2675_v48  ;;  %vm1212_vm4 = vcmp.lt.f32.partialorder %v1211_v9, 0.0004427343 }
 0x2a6   : > { %v997_v60 = vpop.f32.mrf.mxu1 }
 0x2a7   : > { %v1074_v1 = vand.u32 2147483647, %v2893_v57  ;;  %v2897_v2 = vadd.f32 %v2675_v48, %v997_v60  ;;  %vm1042_vm11 = vcmp.ne.f32.partialorder %v2893_v57, %v2893_v57 }
 0x2a8   : > { %v2082_v7 = vpop.f32.mrf.mxu1 }
 0x2a9   : > { %v1090_v8 = vsub.f32 0.0, %v1074_v1  ;;  %v1072_v33 = vand.u32 2147483647, %v2897_v2  ;;  %v2908_v17 = vadd.f32 %v2082_v7, %v2675_v48  ;;  %v1228_v1 = vmul.f32 %v2198_v41, %v1227_v49 }
 0x2aa   : > { %v1000_v61 = vpop.f32.mrf.mxu1  ;;  %vm1040_vm10 = vcmp.ne.f32.partialorder %v2897_v2, %v2897_v2 }
 0x2ab   : > { %v2202_v5 = vpop.eup %2201  ;;  %v1120_v18 = vmul.f32 1.442695, %v1090_v8  ;;  %v1088_v12 = vsub.f32 0.0, %v1072_v33  ;;  %v1075_v22 = vand.u32 2147483647, %v2908_v17  ;;  %v2918_v59 = vadd.f32 %v2675_v48, %v1000_v61 }
 0x2ac   : > { %v1216_v29 = vmul.f32 0.6931472, %v2202_v5  ;;  %v1210_v33 = vmul.f32 %v2889_v50, %v1209_v37  ;;  %vm1043_vm15 = vcmp.ne.f32.partialorder %v2908_v17, %v2908_v17 }
 0x2ad   : > { %2209 = vpow2.f32 %v1120_v18  ;;  %v1116_v54 = vmul.f32 1.442695, %v1088_v12  ;;  %v1091_v38 = vsub.f32 0.0, %v1075_v22  ;;  %v1073_v40 = vand.u32 2147483647, %v2918_v59  ;;  %v2204_v42 = vpop.eup %2203 }
 0x2ae   : > { %v1222_v20 = vsel %vm2911_vm1, %v1219_v25, %v1216_v29  ;;  %v1198_v7 = vmul.f32 0.6931472, %v2204_v42  ;;  %vm1041_vm14 = vcmp.ne.f32.partialorder %v2918_v59, %v2918_v59  ;;  %vm1813_vm1 = vcmask 15360  }
 0x2af   : > { %v2206_v55 = vpop.eup %2205  ;;  %2211 = vpow2.f32 %v1116_v54  ;;  %v1122_v56 = vmul.f32 1.442695, %v1091_v38  ;;  %v1089_v60 = vsub.f32 0.0, %v1073_v40  ;;  %v1278_v63 = vadd.f32 %v1222_v20, %v1022_v52 }
 0x2b0   : > { %v1225_v0 = vmul.f32 0.6931472, %v2206_v55  ;;  %v1204_v41 = vsel %vm2927_vm3, %v1201_v13, %v1198_v7 }
 0x2b1   : > { %v2208_v14 = vpop.eup %2207  ;;  %2213 = vpow2.f32 %v1122_v56  ;;  %v1118_v15 = vmul.f32 1.442695, %v1089_v60  ;;  %v1294_v8 = vsel %vm1038_vm0, %v2755_v62, %v1278_v63  ;;  %v1276_v6 = vadd.f32 %v1204_v41, %v1020_v4 }
 0x2b2   : > { %v1310_v61 = vmax.f32 %v1294_v8, 2.0611537e-09  ;;  %v1231_v25 = vsel %vm2923_vm2, %v1228_v1, %v1225_v0  ;;  %v1207_v52 = vmul.f32 0.6931472, %v2208_v14  ;;  %v1026_v8 = vmax.f32 %v2893_v57, 0.0 }
 0x2b3   : > { %2215 = vpow2.f32 %v1118_v15  ;;  %v1279_v28 = vadd.f32 %v1231_v25, %v1023_v10  ;;  %v1292_v5 = vsel %vm1036_vm6, %v2767_v11, %v1276_v6  ;;  %v1024_v6 = vmax.f32 %v2897_v2, 0.0 }
 0x2b4   : > { %v2942_v26 = vmin.f32 %v1310_v61, 7.389056  ;;  %v1213_v50 = vsel %vm1212_vm4, %v1210_v33, %v1207_v52  ;;  %v1308_v4 = vmax.f32 %v1292_v5, 2.0611537e-09  ;;  %vm1796_vm0 = vcmask 7168  }
 0x2b5   : > { %v1295_v27 = vsel %vm1039_vm5, %v2781_v23, %v1279_v28  ;;  %v1277_v18 = vadd.f32 %v1213_v50, %v1021_v53 }
 0x2b6   : > { %1400 = vrot.lane.b32.xlu1 %v2942_v26, %s2386_s20  ;;  %v1311_v10 = vmax.f32 %v1295_v27, 2.0611537e-09  ;;  %v2957_v29 = vmin.f32 %v1308_v4, 7.389056 }
 0x2b7   : > { %v1293_v12 = vsel %vm1037_vm7, %v2798_v43, %v1277_v18 }
 0x2b8   : > { %v2955_v22 = vmin.f32 %v1311_v10, 7.389056  ;;  %v1309_v49 = vmax.f32 %v1293_v12, 2.0611537e-09  ;;  %v1027_v10 = vmax.f32 %v2908_v17, 0.0 }
 0x2ba   : > { %v2210_v32 = vpop.eup %2209  ;;  %1402 = vrot.lane.b32.xlu0 %v2955_v22, %s2386_s20  ;;  %1396 = vrot.lane.b32.xlu1 %v2957_v29, %s2386_s20  ;;  %v2963_v54 = vmin.f32 %v1309_v49, 7.389056  ;;  %v1025_v49 = vmax.f32 %v2918_v59, 0.0 }
 0x2bb   : > { %v1250_v53 = vadd.f32 1.0, %v2210_v32  ;;  %v1253_v48 = vmul.f32 -0.5, %v2210_v32  ;;  %v1256_v56 = vand.u32 2147483647, %v2210_v32 }
 0x2bc   : > { %v2212_v37 = vpop.eup %2211 }
 0x2bd   : > { %v1232_v38 = vadd.f32 1.0, %v2212_v37  ;;  %2217 = vlog2.f32 %v1250_v53  ;;  %v1235_v9 = vmul.f32 -0.5, %v2212_v37  ;;  %v1254_v55 = vadd.f32 1.0, %v1253_v48 }
 0x2be   : > { %v2214_v40 = vpop.eup %2213  ;;  %1398 = vrot.lane.b32.xlu0 %v2963_v54, %s2386_s20  ;;  %v1238_v7 = vand.u32 2147483647, %v2212_v37  ;;  %vm1257_vm8 = vcmp.lt.f32.partialorder %v1256_v56, 0.0004427343 }
 0x2bf   : > { %2219 = vlog2.f32 %v1232_v38  ;;  %v1259_v42 = vadd.f32 1.0, %v2214_v40  ;;  %v1262_v60 = vmul.f32 -0.5, %v2214_v40  ;;  %v1236_v63 = vadd.f32 1.0, %v1235_v9 }
 0x2c0   : > { %v2216_v20 = vpop.eup %2215  ;;  %v1255_v14 = vmul.f32 %v2210_v32, %v1254_v55  ;;  %v1265_v61 = vand.u32 2147483647, %v2214_v40  ;;  %vm1239_vm9 = vcmp.lt.f32.partialorder %v1238_v7, 0.0004427343 }
 0x2c1   : > { %v1241_v46 = vadd.f32 1.0, %v2216_v20  ;;  %2221 = vlog2.f32 %v1259_v42  ;;  %v1244_v0 = vmul.f32 -0.5, %v2216_v20  ;;  %v1263_v33 = vadd.f32 1.0, %v1262_v60 }
 0x2c2   : > { %v1237_v41 = vmul.f32 %v2212_v37, %v1236_v63  ;;  %v1247_v50 = vand.u32 2147483647, %v2216_v20  ;;  %vm1266_vm12 = vcmp.lt.f32.partialorder %v1265_v61, 0.0004427343 }
 0x2c3   : > { %2223 = vlog2.f32 %v1241_v46  ;;  %v1245_v52 = vadd.f32 1.0, %v1244_v0  ;;  %v1264_v12 = vmul.f32 %v2214_v40, %v1263_v33 }
 0x2c4   : > { %2225 = vlog2.f32 %v2800_v45  ;;  %vm1248_vm13 = vcmp.lt.f32.partialorder %v1247_v50, 0.0004427343 }
 0x2c5   : > { %2227 = vlog2.f32 %v2823_v3  ;;  %v1246_v53 = vmul.f32 %v2216_v20, %v1245_v52 }
 0x2c6   : > { %2229 = vlog2.f32 %v2848_v31 }
 0x2c7   : > { %2231 = vlog2.f32 %v2829_v16 }
 0x2c8   : > { %2233 = vlog2.f32 %v2880_v47 }
 0x2c9   : > { %2235 = vlog2.f32 %v2867_v30 }
 0x2ca   : > { %v2218_v1 = vpop.eup %2217  ;;  %2237 = vlog2.f32 %v2869_v35 }
 0x2cb   : > { %v1252_v13 = vmul.f32 0.6931472, %v2218_v1  ;;  %2239 = vlog2.f32 %v2882_v58 }
 0x2cc   : > { %v2220_v15 = vpop.eup %2219  ;;  %2241 = vlog2.f32 %v2942_v26 }
 0x2cd   : > { %v1234_v25 = vmul.f32 0.6931472, %v2220_v15  ;;  %v1258_v28 = vsel %vm1257_vm8, %v1255_v14, %v1252_v13  ;;  %2243 = vlog2.f32 %v2955_v22 }
 0x2ce   : > { %v1282_v45 = vadd.f32 %v1258_v28, %v1026_v8  ;;  %v2222_v27 = vpop.eup %2221  ;;  %2245 = vlog2.f32 %v2957_v29 }
 0x2cf   : > { %v1240_v3 = vsel %vm1239_vm9, %v1237_v41, %v1234_v25  ;;  %v1261_v4 = vmul.f32 0.6931472, %v2222_v27  ;;  %2247 = vlog2.f32 %v2963_v54 }
 0x2d0   : > { %v2224_v5 = vpop.eup %2223  ;;  %v1280_v18 = vadd.f32 %v1240_v3, %v1024_v6  ;;  %v1298_v37 = vsel %vm1042_vm11, %v2893_v57, %v1282_v45 }
 0x2d1   : > { %v1243_v32 = vmul.f32 0.6931472, %v2224_v5  ;;  %v1267_v38 = vsel %vm1266_vm12, %v1264_v12, %v1261_v4  ;;  %v1314_v20 = vmax.f32 %v1298_v37, 2.0611537e-09  ;;  %v2226_v60 = vpop.eup %2225 }
 0x2d2   : > { %v1296_v31 = vsel %vm1040_vm10, %v2897_v2, %v1280_v18  ;;  %v1283_v48 = vadd.f32 %v1267_v38, %v1027_v10  ;;  %v2228_v63 = vpop.eup %2227  ;;  %v1337_v8 = vmul.f32 0.6931472, %v2226_v60  ;;  %v3037_v60 = vld [vmem:[%s3020_s28 + $0x30] sm:$0xff] }
 0x2d3   : > { %v1312_v42 = vmax.f32 %v1296_v31, 2.0611537e-09  ;;  %v1249_v46 = vsel %vm1248_vm13, %v1246_v53, %v1243_v32  ;;  %v1330_v0 = vmin.f32 %v1314_v20, 7.389056  ;;  %v2230_v7 = vpop.eup %2229  ;;  %v1333_v14 = vmul.f32 0.6931472, %v2228_v63 }
 0x2d4   : > { %v1281_v9 = vadd.f32 %v1249_v46, %v1025_v49  ;;  %v1299_v56 = vsel %vm1043_vm15, %v2908_v17, %v1283_v48  ;;  %v2232_v30 = vpop.eup %2231  ;;  %v1335_v15 = vmul.f32 0.6931472, %v2230_v7 }
 0x2d5   : > { %v1328_v40 = vmin.f32 %v1312_v42, 7.389056  ;;  %v1315_v1 = vmax.f32 %v1299_v56, 2.0611537e-09  ;;  %v2234_v35 = vpop.eup %2233  ;;  %v1339_v26 = vmul.f32 0.6931472, %v2232_v30 }
 0x2d6   : > { %v1297_v55 = vsel %vm1041_vm14, %v2918_v59, %v1281_v9  ;;  %v2236_v58 = vpop.eup %2235  ;;  %v1341_v33 = vmul.f32 0.6931472, %v2234_v35  ;;  %v3023_v42 = vld [vmem:[%s3020_s28 + $0x10] sm:$0xff]  ;;  %v3027_v9 = vld [vmem:[%s3020_s28] sm:$0xff] }
 0x2d7   : > { %1404 = vrot.lane.b32.xlu1 %v1328_v40, %s2386_s20  ;;  %v1313_v16 = vmax.f32 %v1297_v55, 2.0611537e-09  ;;  %v1331_v13 = vmin.f32 %v1315_v1, 7.389056  ;;  %2249 = vlog2.f32 %v1328_v40  ;;  %v2238_v61 = vpop.eup %2237  ;;  %v1345_v25 = vmul.f32 0.6931472, %v2236_v58 }
 0x2d8   : > { %2251 = vlog2.f32 %v1330_v0  ;;  %v2240_v22 = vpop.eup %2239  ;;  %v1347_v29 = vmul.f32 0.6931472, %v2238_v61  ;;  %v3030_v40 = vld [vmem:[%s3020_s28 + $0x18] sm:$0xff]  ;;  %v3033_v55 = vld [vmem:[%s3020_s28 + $0x8] sm:$0xff] }
 0x2d9   : > { %v1329_v47 = vmin.f32 %v1313_v16, 7.389056  ;;  %v2242_v41 = vpop.eup %2241  ;;  %v1343_v52 = vmul.f32 0.6931472, %v2240_v22  ;;  %v3057_v61 = vld [vmem:[%s3020_s28 + $0x28] sm:$0xff] }
 0x2da   : > { %v2244_v54 = vpop.eup %2243  ;;  %v1353_v28 = vmul.f32 0.6931472, %v2242_v41 }
 0x2db   : > { %1406 = vrot.lane.b32.xlu0 %v1329_v47, %s2386_s20  ;;  %1408 = vrot.lane.b32.xlu1 %v1330_v0, %s2386_s20  ;;  %2253 = vlog2.f32 %v1329_v47  ;;  %v2246_v6 = vpop.eup %2245  ;;  %v1355_v45 = vmul.f32 0.6931472, %v2244_v54  ;;  %v3043_v0 = vld [vmem:[%s3020_s28 + $0x38] sm:$0xff] }
 0x2dc   : > { %2255 = vlog2.f32 %v1331_v13  ;;  %v2248_v50 = vpop.eup %2247  ;;  %v1349_v27 = vmul.f32 0.6931472, %v2246_v6 }
 0x2dd   : > { %v1351_v18 = vmul.f32 0.6931472, %v2248_v50  ;;  %v3078_v50 = vld [vmem:[%s3020_s28 + $0x48] sm:$0xff] }
 0x2df   : > { %1410 = vrot.lane.b32.xlu0 %v1331_v13, %s2386_s20  ;;  %1524 = vrot.lane.b32.xlu1 %v1333_v14, %s2386_s20  ;;  %v3048_v14 = vld [vmem:[%s3020_s28 + $0x20] sm:$0xff] }
 0x2e3   : > { %1526 = vrot.lane.b32.xlu0 %v1335_v15, %s2386_s20  ;;  %1528 = vrot.lane.b32.xlu1 %v1337_v8, %s2386_s20 }
 0x2e4   : > { %v2250_v3 = vpop.eup %2249 }
 0x2e5   : > { %v2252_v5 = vpop.eup %2251  ;;  %v1357_v10 = vmul.f32 0.6931472, %v2250_v3 }
 0x2e6   : > { %v1361_v49 = vmul.f32 0.6931472, %v2252_v5 }
 0x2e7   : > { %1530 = vrot.lane.b32.xlu0 %v1339_v26, %s2386_s20  ;;  %1532 = vrot.lane.b32.xlu1 %v1341_v33, %s2386_s20 }
 0x2e8   : > { %v2254_v4 = vpop.eup %2253 }
 0x2e9   : > { %v1359_v12 = vmul.f32 0.6931472, %v2254_v4  ;;  %v2256_v32 = vpop.eup %2255 }
 0x2ea   : > { %v1363_v53 = vmul.f32 0.6931472, %v2256_v32 }
 0x2eb   : > { %1538 = vrot.lane.b32.xlu0 %v1347_v29, %s2386_s20  ;;  %1536 = vrot.lane.b32.xlu1 %v1345_v25, %s2386_s20  ;;  %v3066_v25 = vld [vmem:[%s3020_s28 + $0x58] sm:$0xff] }
 0x2ef   : > { %1534 = vrot.lane.b32.xlu0 %v1343_v52, %s2386_s20  ;;  %1544 = vrot.lane.b32.xlu1 %v1353_v28, %s2386_s20 }
 0x2f3   : > { %1546 = vrot.lane.b32.xlu0 %v1355_v45, %s2386_s20  ;;  %1540 = vrot.lane.b32.xlu1 %v1349_v27, %s2386_s20 }
 0x2f7   : > { %1542 = vrot.lane.b32.xlu0 %v1351_v18, %s2386_s20  ;;  %1548 = vrot.lane.b32.xlu1 %v1357_v10, %s2386_s20 }
 0x2fb   : > { %1550 = vrot.lane.b32.xlu0 %v1359_v12, %s2386_s20  ;;  %1552 = vrot.lane.b32.xlu1 %v1361_v49, %s2386_s20 }
 0x2ff   : > { %1554 = vrot.lane.b32.xlu0 %v1363_v53, %s2386_s20  ;;  %s2325_s20 = sshll.u32 %s2388_s19, 4  ;;  %s2326_s20 = int_to_ptr.vmem [resolvable:$false] %s2325_s20 }
 0x300   : > { %s2327_s13 = scalar_lea.vmem %s2326_s20, 4096  ;;  %p2328_p0 = scmp.lt.s32.totalorder %s3293_s14, %s2326_s20 }
 0x301   : > { %v1385_v31 = vpop.permute.xlu1 %1384  ;;  %p2329_p1 = scmp.lt.s32.totalorder %s2327_s13, %s2321_s18 }
 0x302   : > { %v1430_v48 = vmul.f32 %v1385_v31, %v3023_v42 }
 0x303   : > { %p2330_p2 = por %p2329_p1, %p2328_p0 }
 0x304   : > { %v1446_v16 = vadd.f32 %v1430_v48, %v2678_v19 }
 0x305   : > { %v1381_v38 = vpop.permute.xlu1 %1380  ;;  %p2331_p3 = pnand %p2330_p2, %p2324_p13 }
 0x306   : > { %v1387_v37 = vpop.permute.xlu0 %1386  ;;  %v1428_v56 = vmul.f32 %v1381_v38, %v3027_v9  ;;  %2257 = vtanh.f32 %v1446_v16 }
 0x307   : > { %v1431_v63 = vmul.f32 %v1387_v37, %v3030_v40 }
 0x308   : > { %v1444_v13 = vadd.f32 %v1428_v56, %v2682_v21 }
 0x309   : > { %v1447_v35 = vadd.f32 %v1431_v63, %v2686_v24 }
 0x30a   : > { %v1383_v46 = vpop.permute.xlu0 %1382  ;;  %2259 = vtanh.f32 %v1444_v13 }
 0x30b   : > { %v1429_v47 = vmul.f32 %v1383_v46, %v3033_v55  ;;  %2261 = vtanh.f32 %v1447_v35 }
 0x30c   : > { %v1393_v20 = vpop.permute.xlu1 %1392 }
 0x30d   : > { %v1434_v7 = vmul.f32 %v1393_v20, %v3037_v60  ;;  %v1445_v15 = vadd.f32 %v1429_v47, %v2690_v36  ;;  %v3061_v36 = vld [vmem:[%s3020_s28 + $0x50] sm:$0xff]  ;;  %v3111_v47 = vld [vmem:[%s3020_s28 + $0x60] sm:$0xff] }
 0x30e   : > { %v1395_v1 = vpop.permute.xlu0 %1394 }
 0x30f   : > { %v1435_v19 = vmul.f32 %v1395_v1, %v3043_v0  ;;  %v1450_v8 = vadd.f32 %v1434_v7, %v2694_v34  ;;  %2263 = vtanh.f32 %v1445_v15 }
 0x310   : > { %v1389_v30 = vpop.permute.xlu1 %1388 }
 0x311   : > { %v1432_v58 = vmul.f32 %v1389_v30, %v3048_v14  ;;  %v1451_v21 = vadd.f32 %v1435_v19, %v2702_v44  ;;  %2265 = vtanh.f32 %v1450_v8  ;;  %v3069_v44 = vld [vmem:[%s3020_s28 + $0x40] sm:$0xff] }
 0x312   : > { %v1391_v26 = vpop.permute.xlu0 %1390 }
 0x313   : > { %v1448_v24 = vadd.f32 %v1432_v58, %v2697_v39  ;;  %2267 = vtanh.f32 %v1451_v21  ;;  %v1433_v34 = vmul.f32 %v1391_v26, %v3057_v61  ;;  %v3073_v28 = vpop.eup %2257  ;;  %v3119_v21 = vld [vmem:[%s3020_s28 + $0x68] sm:$0xff]  ;;  %v3122_v26 = vld [vmem:[%s3020_s28 + $0x70] sm:$0xff] }
 0x314   : > { %v1606_v5 = vmul.f32 %v3073_v28, %v3073_v28 }
 0x315   : > { %2269 = vtanh.f32 %v1448_v24  ;;  %v1449_v54 = vadd.f32 %v1433_v34, %v2706_v51 }
 0x316   : > { %v1622_v49 = vsub.f32 1.0, %v1606_v5  ;;  %v1478_v5 = vmul.f32 -0.5, %v3023_v42 }
 0x317   : > { %v3080_v27 = vpop.eup %2259  ;;  %2271 = vtanh.f32 %v1449_v54 }
 0x318   : > { %v3085_v51 = vpop.eup %2261  ;;  %v1604_v12 = vmul.f32 %v3080_v27, %v3080_v27  ;;  %v1638_v46 = vadd.f32 1e-06, %v1622_v49 }
 0x31a   : > { %v1620_v38 = vsub.f32 1.0, %v1604_v12 }
 0x31c   : > { %v3089_v10 = vpop.eup %2263  ;;  %v1636_v63 = vadd.f32 1e-06, %v1620_v38 }
 0x31d   : > { %v1605_v53 = vmul.f32 %v3089_v10, %v3089_v10 }
 0x31e   : > { %v3091_v4 = vpop.eup %2265 }
 0x31f   : > { %v1610_v31 = vmul.f32 %v3091_v4, %v3091_v4  ;;  %v1621_v56 = vsub.f32 1.0, %v1605_v53 }
 0x320   : > { %v3097_v32 = vpop.eup %2267 }
 0x321   : > { %v1611_v20 = vmul.f32 %v3097_v32, %v3097_v32  ;;  %v1626_v16 = vsub.f32 1.0, %v1610_v31  ;;  %v1637_v30 = vadd.f32 1e-06, %v1621_v56  ;;  %v1494_v56 = vmul.f32 %v1478_v5, %v3023_v42 }
 0x322   : > { %v3104_v37 = vpop.eup %2269 }
 0x323   : > { %v1627_v7 = vsub.f32 1.0, %v1611_v20  ;;  %v1642_v8 = vadd.f32 1e-06, %v1626_v16  ;;  %v1480_v20 = vmul.f32 -0.5, %v3048_v14 }
 0x324   : > { %v3113_v13 = vpop.eup %2271 }
 0x325   : > { %v1609_v24 = vmul.f32 %v3113_v13, %v3113_v13  ;;  %v3161_v42 = vmul.f32 %v1480_v20, %v3048_v14 }
 0x328   : > { %v1401_v33 = vpop.permute.xlu1 %1400 }
 0x329   : > { %v1438_v29 = vmul.f32 %v1401_v33, %v3061_v36  ;;  %v1643_v33 = vadd.f32 1e-06, %v1627_v7 }
 0x32b   : > { %v1454_v39 = vadd.f32 %v1438_v29, %v2755_v62 }
 0x32c   : > { %v1403_v22 = vpop.permute.xlu0 %1402  ;;  %v1397_v41 = vpop.permute.xlu1 %1396 }
 0x32d   : > { %v1439_v52 = vmul.f32 %v1403_v22, %v3066_v25  ;;  %v1436_v6 = vmul.f32 %v1397_v41, %v3069_v44  ;;  %2273 = vtanh.f32 %v1454_v39  ;;  %v1476_v39 = vmul.f32 -0.5, %v3027_v9 }
 0x32f   : > { %v1455_v3 = vadd.f32 %v1439_v52, %v2781_v23  ;;  %v1452_v18 = vadd.f32 %v1436_v6, %v2767_v11  ;;  %v1607_v23 = vmul.f32 %v3085_v51, %v3085_v51 }
 0x330   : > { %v1399_v45 = vpop.permute.xlu0 %1398 }
 0x331   : > { %v1437_v62 = vmul.f32 %v1399_v45, %v3078_v50  ;;  %2275 = vtanh.f32 %v1455_v3  ;;  %v1623_v48 = vsub.f32 1.0, %v1607_v23 }
 0x332   : > { %2277 = vtanh.f32 %v1452_v18  ;;  %v1625_v18 = vsub.f32 1.0, %v1609_v24  ;;  %v1482_v24 = vmul.f32 -0.5, %v3037_v60 }
 0x333   : > { %v1453_v11 = vadd.f32 %v1437_v62, %v2798_v43  ;;  %v1608_v43 = vmul.f32 %v3104_v37, %v3104_v37  ;;  %v1639_v1 = vadd.f32 1e-06, %v1623_v48  ;;  %v1479_v48 = vmul.f32 -0.5, %v3030_v40 }
 0x334   : > { %v1641_v16 = vadd.f32 1e-06, %v1625_v18 }
 0x335   : > { %2279 = vtanh.f32 %v1453_v11  ;;  %v1624_v15 = vsub.f32 1.0, %v1608_v43  ;;  %v1483_v43 = vmul.f32 -0.5, %v3043_v0 }
 0x336   : > { %2281 = vlog2.f32 %v1638_v46  ;;  %v1477_v46 = vmul.f32 -0.5, %v3033_v55 }
 0x337   : > { %2283 = vlog2.f32 %v1636_v63  ;;  %v1640_v6 = vadd.f32 1e-06, %v1624_v15 }
 0x338   : > { %2285 = vlog2.f32 %v1639_v1 }
 0x339   : > { %2287 = vlog2.f32 %v1637_v30 }
 0x33a   : > { %v3115_v35 = vpop.eup %2273  ;;  %2289 = vlog2.f32 %v1642_v8  ;;  %v1493_v8 = vmul.f32 %v1477_v46, %v3033_v55 }
 0x33b   : > { %v1614_v29 = vmul.f32 %v3115_v35, %v3115_v35 }
 0x33d   : > { %v1630_v23 = vsub.f32 1.0, %v1614_v29 }
 0x33e   : > { %v3126_v34 = vpop.eup %2275 }
 0x33f   : > { %v3131_v41 = vpop.eup %2277  ;;  %v1615_v62 = vmul.f32 %v3126_v34, %v3126_v34  ;;  %v1646_v30 = vadd.f32 1e-06, %v1630_v23  ;;  %v1487_v23 = vmul.f32 -0.5, %v3066_v25 }
 0x340   : > { %v1612_v11 = vmul.f32 %v3131_v41, %v3131_v41 }
 0x341   : > { %v1631_v63 = vsub.f32 1.0, %v1615_v62 }
 0x342   : > { %v3146_v53 = vpop.eup %2279 }
 0x343   : > { %v2282_v1 = vpop.eup %2281  ;;  %v1613_v15 = vmul.f32 %v3146_v53, %v3146_v53  ;;  %v1647_v55 = vadd.f32 1e-06, %v1631_v63 }
 0x349   : > { %v1405_v19 = vpop.permute.xlu1 %1404 }
 0x34a   : > { %v1440_v58 = vmul.f32 %v1405_v19, %v3111_v47  ;;  %v1628_v19 = vsub.f32 1.0, %v1612_v11 }
 0x34c   : > { %v1456_v22 = vadd.f32 %v1440_v58, %v2897_v2  ;;  %v3138_v2 = vld [vmem:[%s3020_s28 + $0x78] sm:$0xff] }
 0x34d   : > { %v1407_v54 = vpop.permute.xlu0 %1406  ;;  %v1409_v52 = vpop.permute.xlu1 %1408 }
 0x34e   : > { %2291 = vtanh.f32 %v1456_v22  ;;  %v1441_v45 = vmul.f32 %v1407_v54, %v3119_v21  ;;  %v1442_v3 = vmul.f32 %v1409_v52, %v3122_v26  ;;  %v2284_v54 = vpop.eup %2283  ;;  %v1657_v52 = vmul.f32 0.6931472, %v2282_v1 }
 0x34f   : > { %2293 = vlog2.f32 %v1643_v33  ;;  %v1653_v20 = vmul.f32 0.6931472, %v2284_v54 }
 0x350   : > { %v1457_v12 = vadd.f32 %v1441_v45, %v2918_v59  ;;  %v1458_v49 = vadd.f32 %v1442_v3, %v2893_v57  ;;  %2295 = vlog2.f32 %v1640_v6  ;;  %v1492_v57 = vmul.f32 %v1476_v39, %v3027_v9  ;;  %v2286_v6 = vpop.eup %2285 }
 0x351   : > { %v1411_v31 = vpop.permute.xlu0 %1410  ;;  %v1525_v38 = vpop.permute.xlu1 %1524  ;;  %v1495_v9 = vmul.f32 %v1479_v48, %v3030_v40  ;;  %v1499_v39 = vmul.f32 %v1483_v43, %v3043_v0  ;;  %v1644_v40 = vadd.f32 1e-06, %v1628_v19  ;;  %v1629_v3 = vsub.f32 1.0, %v1613_v15 }
 0x352   : > { %2297 = vtanh.f32 %v1457_v12  ;;  %v1443_v59 = vmul.f32 %v1411_v31, %v3138_v2  ;;  %v1572_v22 = vsub.f32 %v1492_v57, %v1525_v38  ;;  %v2288_v14 = vpop.eup %2287  ;;  %v1498_v12 = vmul.f32 %v1482_v24, %v3037_v60 }
 0x353   : > { %2299 = vtanh.f32 %v1458_v49  ;;  %v1486_v49 = vmul.f32 -0.5, %v3061_v36  ;;  %v2290_v11 = vpop.eup %2289  ;;  %v1484_v57 = vmul.f32 -0.5, %v3069_v44  ;;  %v1645_v60 = vadd.f32 1e-06, %v1629_v3 }
 0x354   : > { %v1459_v7 = vadd.f32 %v1443_v59, %v2908_v17  ;;  %v1481_v17 = vmul.f32 -0.5, %v3057_v61  ;;  %v1965_v31 = vadd.f32 -0.9189385, %v1572_v22  ;;  %v1659_v59 = vmul.f32 0.6931472, %v2286_v6 }
 0x355   : > { %v1527_v58 = vpop.permute.xlu0 %1526  ;;  %v1529_v33 = vpop.permute.xlu1 %1528  ;;  %v3179_v19 = vmul.f32 %v1487_v23, %v3066_v25  ;;  %v1655_v22 = vmul.f32 0.6931472, %v2288_v14 }
 0x356   : > { %2301 = vtanh.f32 %v1459_v7  ;;  %v1574_v29 = vsub.f32 %v1494_v56, %v1529_v33  ;;  %v1573_v5 = vsub.f32 %v1493_v8, %v1527_v58  ;;  %v1497_v46 = vmul.f32 %v1481_v17, %v3057_v61 }
 0x357   : > { %2303 = vlog2.f32 %v1641_v16  ;;  %v1684_v8 = vsub.f32 %v1965_v31, %v1653_v20  ;;  %v1485_v17 = vmul.f32 -0.5, %v3078_v50 }
 0x358   : > { %v1967_v45 = vadd.f32 -0.9189385, %v1574_v29  ;;  %2305 = vlog2.f32 %v1646_v30  ;;  %v1966_v63 = vadd.f32 -0.9189385, %v1573_v5  ;;  %v1502_v30 = vmul.f32 %v1486_v49, %v3061_v36 }
 0x359   : > { %v1531_v18 = vpop.permute.xlu0 %1530  ;;  %v1533_v62 = vpop.permute.xlu1 %1532  ;;  %2307 = vlog2.f32 %v1647_v55  ;;  %v1500_v29 = vmul.f32 %v1484_v57, %v3069_v44 }
 0x35a   : > { %v1686_v0 = vsub.f32 %v1967_v45, %v1657_v52  ;;  %v1575_v38 = vsub.f32 %v1495_v9, %v1531_v18  ;;  %2309 = vlog2.f32 %v1644_v40  ;;  %v1576_v61 = vsub.f32 %v3161_v42, %v1533_v62 }
 0x35b   : > { %v3170_v48 = vpop.eup %2291  ;;  %v1665_v52 = vmul.f32 0.6931472, %v2290_v11  ;;  %2311 = vlog2.f32 %v1645_v60 }
 0x35c   : > { %v2294_v56 = vpop.eup %2293  ;;  %v1968_v43 = vadd.f32 -0.9189385, %v1575_v38  ;;  %1752 = vrot.lane.b32.xlu1 %v1686_v0, %s2387_s9  ;;  %v1616_v16 = vmul.f32 %v3170_v48, %v3170_v48  ;;  %v1969_v55 = vadd.f32 -0.9189385, %v1576_v61  ;;  %v1501_v0 = vmul.f32 %v1485_v17, %v3078_v50 }
 0x35d   : > { %v1539_v1 = vpop.permute.xlu0 %1538  ;;  %v1537_v7 = vpop.permute.xlu1 %1536  ;;  %v1667_v31 = vmul.f32 0.6931472, %v2294_v56  ;;  %v1488_v38 = vmul.f32 -0.5, %v3111_v47 }
 0x35e   : > { %v2296_v15 = vpop.eup %2295  ;;  %v1687_v58 = vsub.f32 %v1968_v43, %v1659_v59  ;;  %v1579_v33 = vsub.f32 %v1499_v39, %v1539_v1  ;;  %v1578_v9 = vsub.f32 %v1498_v12, %v1537_v7  ;;  %v1632_v42 = vsub.f32 1.0, %v1616_v16 }
 0x35f   : > { %v3181_v24 = vpop.eup %2297  ;;  %v1685_v39 = vsub.f32 %v1966_v63, %v1655_v22  ;;  %v1661_v12 = vmul.f32 0.6931472, %v2296_v15 }
 0x360   : > { %v3185_v54 = vpop.eup %2299  ;;  %v1971_v36 = vadd.f32 -0.9189385, %v1578_v9  ;;  %1754 = vrot.lane.b32.xlu0 %v1687_v58, %s2387_s9  ;;  %1748 = vrot.lane.b32.xlu1 %v1684_v8, %s2387_s9  ;;  %v1617_v25 = vmul.f32 %v3181_v24, %v3181_v24  ;;  %v1648_v44 = vadd.f32 1e-06, %v1632_v42  ;;  %v1972_v3 = vadd.f32 -0.9189385, %v1579_v33 }
 0x361   : > { %v1535_v6 = vpop.permute.xlu0 %1534  ;;  %v1545_v45 = vpop.permute.xlu1 %1544  ;;  %v1618_v40 = vmul.f32 %v3185_v54, %v3185_v54  ;;  %v1688_v59 = vsub.f32 %v1969_v55, %v1661_v12  ;;  %v1504_v58 = vmul.f32 %v1488_v38, %v3111_v47  ;;  %v1489_v42 = vmul.f32 -0.5, %v3119_v21 }
 0x362   : > { %v1690_v14 = vsub.f32 %v1971_v36, %v1665_v52  ;;  %v1577_v5 = vsub.f32 %v1497_v46, %v1535_v6  ;;  %v1582_v18 = vsub.f32 %v1502_v30, %v1545_v45  ;;  %2313 = vlog2.f32 %v1648_v44 }
 0x363   : > { %v3193_v62 = vpop.eup %2301  ;;  %v1633_v49 = vsub.f32 1.0, %v1617_v25  ;;  %v1634_v23 = vsub.f32 1.0, %v1618_v40  ;;  %v1691_v61 = vsub.f32 %v1972_v3, %v1667_v31  ;;  %v1505_v44 = vmul.f32 %v1489_v42, %v3119_v21 }
 0x364   : > { %v2304_v11 = vpop.eup %2303  ;;  %1750 = vrot.lane.b32.xlu0 %v1685_v39, %s2387_s9  ;;  %1760 = vrot.lane.b32.xlu1 %v1690_v14, %s2387_s9  ;;  %v1619_v46 = vmul.f32 %v3193_v62, %v3193_v62  ;;  %v1970_v57 = vadd.f32 -0.9189385, %v1577_v5  ;;  %v1975_v56 = vadd.f32 -0.9189385, %v1582_v18  ;;  %v1491_v3 = vmul.f32 -0.5, %v3138_v2 }
 0x365   : > { %v2306_v20 = vpop.eup %2305  ;;  %v1547_v43 = vpop.permute.xlu0 %1546  ;;  %v1649_v16 = vadd.f32 1e-06, %v1633_v49  ;;  %v1650_v63 = vadd.f32 1e-06, %v1634_v23  ;;  %v1663_v30 = vmul.f32 0.6931472, %v2304_v11 }
 0x366   : > { %v1541_v60 = vpop.permute.xlu1 %1540  ;;  %v1583_v1 = vsub.f32 %v3179_v19, %v1547_v43  ;;  %v1635_v50 = vsub.f32 1.0, %v1619_v46  ;;  %v2308_v15 = vpop.eup %2307  ;;  %v1673_v8 = vmul.f32 0.6931472, %v2306_v20  ;;  %v1490_v19 = vmul.f32 -0.5, %v3122_v26 }
 0x367   : > { %v1580_v7 = vsub.f32 %v1500_v29, %v1541_v60  ;;  %2315 = vlog2.f32 %v1649_v16  ;;  %v2310_v33 = vpop.eup %2309  ;;  %v1689_v9 = vsub.f32 %v1970_v57, %v1663_v30  ;;  %v1675_v55 = vmul.f32 0.6931472, %v2308_v15 }
 0x368   : > { %1762 = vrot.lane.b32.xlu0 %v1691_v61, %s2387_s9  ;;  %1756 = vrot.lane.b32.xlu1 %v1688_v59, %s2387_s9  ;;  %2317 = vlog2.f32 %v1650_v63  ;;  %v1651_v29 = vadd.f32 1e-06, %v1635_v50  ;;  %v1694_v52 = vsub.f32 %v1975_v56, %v1673_v8  ;;  %v1976_v36 = vadd.f32 -0.9189385, %v1583_v1  ;;  %v2312_v47 = vpop.eup %2311 }
 0x369   : > { %v1543_v22 = vpop.permute.xlu0 %1542  ;;  %v1973_v25 = vadd.f32 -0.9189385, %v1580_v7  ;;  %v1669_v6 = vmul.f32 0.6931472, %v2310_v33  ;;  %v1506_v12 = vmul.f32 %v1490_v19, %v3122_v26  ;;  %v1671_v11 = vmul.f32 0.6931472, %v2312_v47 }
 0x36a   : > { %v1549_v17 = vpop.permute.xlu1 %1548  ;;  %v1581_v39 = vsub.f32 %v1501_v0, %v1543_v22  ;;  %2319 = vlog2.f32 %v1651_v29  ;;  %v1695_v14 = vsub.f32 %v1976_v36, %v1675_v55  ;;  %v1507_v21 = vmul.f32 %v1491_v3, %v3138_v2 }
 0x36b   : > { %v1584_v45 = vsub.f32 %v1504_v58, %v1549_v17  ;;  %v1692_v5 = vsub.f32 %v1973_v25, %v1669_v6  ;;  %v1718_v8 = vmul.f32 2.0, %v3073_v28  ;;  %v1719_v22 = vmul.f32 2.0, %v3085_v51 }
 0x36c   : > { %1758 = vrot.lane.b32.xlu0 %v1689_v9, %s2387_s9  ;;  %1768 = vrot.lane.b32.xlu1 %v1694_v52, %s2387_s9  ;;  %v1974_v18 = vadd.f32 -0.9189385, %v1581_v39  ;;  %v1716_v17 = vmul.f32 2.0, %v3080_v27  ;;  %v1717_v25 = vmul.f32 2.0, %v3089_v10  ;;  %v1722_v51 = vmul.f32 2.0, %v3091_v4 }
 0x36d   : > { %v1551_v40 = vpop.permute.xlu0 %1550  ;;  %v1977_v0 = vadd.f32 -0.9189385, %v1584_v45  ;;  %v1720_v10 = vmul.f32 2.0, %v3104_v37 }
 0x36e   : > { %v1553_v49 = vpop.permute.xlu1 %1552  ;;  %v1585_v38 = vsub.f32 %v1505_v44, %v1551_v40  ;;  %v1693_v46 = vsub.f32 %v1974_v18, %v1671_v11  ;;  %v1723_v44 = vmul.f32 2.0, %v3097_v32  ;;  %v1726_v32 = vmul.f32 2.0, %v3115_v35 }
 0x36f   : > { %v2314_v23 = vpop.eup %2313  ;;  %v1586_v20 = vsub.f32 %v1506_v12, %v1553_v49  ;;  %v1721_v12 = vmul.f32 2.0, %v3113_v13  ;;  %v1724_v13 = vmul.f32 2.0, %v3131_v41  ;;  %v1728_v41 = vmul.f32 2.0, %v3170_v48 }
 0x370   : > { %1770 = vrot.lane.b32.xlu0 %v1695_v14, %s2387_s9  ;;  %1764 = vrot.lane.b32.xlu1 %v1692_v5, %s2387_s9  ;;  %v1677_v31 = vmul.f32 0.6931472, %v2314_v23  ;;  %v1978_v16 = vadd.f32 -0.9189385, %v1585_v38  ;;  %v1727_v38 = vmul.f32 2.0, %v3126_v34 }
 0x371   : > { %v1555_v59 = vpop.permute.xlu0 %1554  ;;  %v1979_v56 = vadd.f32 -0.9189385, %v1586_v20 }
 0x372   : > { %v1696_v57 = vsub.f32 %v1977_v0, %v1677_v31  ;;  %v1587_v63 = vsub.f32 %v1507_v21, %v1555_v59 }
 0x374   : > { %v2316_v43 = vpop.eup %2315  ;;  %1766 = vrot.lane.b32.xlu0 %v1693_v46, %s2387_s9  ;;  %1772 = vrot.lane.b32.xlu1 %v1696_v57, %s2387_s9  ;;  %v1980_v50 = vadd.f32 -0.9189385, %v1587_v63 }
 0x375   : > { %v2318_v26 = vpop.eup %2317  ;;  %v1679_v60 = vmul.f32 0.6931472, %v2316_v43  ;;  %v1725_v43 = vmul.f32 2.0, %v3146_v53 }
 0x376   : > { %v1681_v61 = vmul.f32 0.6931472, %v2318_v26 }
 0x377   : > { %v1697_v1 = vsub.f32 %v1978_v16, %v1679_v60  ;;  %v2320_v7 = vpop.eup %2319 }
 0x378   : > { %v1698_v2 = vsub.f32 %v1979_v56, %v1681_v61  ;;  %v1683_v30 = vmul.f32 0.6931472, %v2320_v7  ;;  %v1729_v56 = vmul.f32 2.0, %v3181_v24  ;;  %v1731_v24 = vmul.f32 2.0, %v3193_v62 }
 0x379   : > { %1774 = vrot.lane.b32.xlu0 %v1697_v1, %s2387_s9  ;;  %v1730_v1 = vmul.f32 2.0, %v3185_v54 }
 0x37a   : > { %1776 = vrot.lane.b32.xlu1 %v1698_v2, %s2387_s9  ;;  %v1699_v15 = vsub.f32 %v1980_v50, %v1683_v30 }
 0x37d   : > { %1778 = vrot.lane.b32.xlu0 %v1699_v15, %s2387_s9 }
 0x3ce   : > { %v1753_v58 = vpop.permute.xlu1 %1752 }
 0x3cf   : > { %v1799_v33 = vsel %vm1796_vm0, %v1718_v8, %v1753_v58 }
 0x3d0   : > { %v1816_v9 = vsel %vm1813_vm1, %v1799_v33, 0.0 }
 0x3d1   : > { %1832 = vst [vmem:[%s3226_s11 + $0x10] sm:$0xff] %v1816_v9 }
 0x3d2   : > { %v1755_v42 = vpop.permute.xlu0 %1754  ;;  %v1749_v19 = vpop.permute.xlu1 %1748 }
 0x3d3   : > { %v1800_v28 = vsel %vm1796_vm0, %v1719_v22, %v1755_v42  ;;  %v1797_v29 = vsel %vm1796_vm0, %v1716_v17, %v1749_v19 }
 0x3d4   : > { %v1817_v52 = vsel %vm1813_vm1, %v1800_v28, 0.0  ;;  %v1814_v36 = vsel %vm1813_vm1, %v1797_v29, 0.0 }
 0x3d5   : > { %1833 = vst [vmem:[%s3226_s11 + $0x18] sm:$0xff] %v1817_v52  ;;  %1830 = vst [vmem:[%s3226_s11] sm:$0xff] %v1814_v36 }
 0x3d6   : > { %v1751_v39 = vpop.permute.xlu0 %1750  ;;  %v1761_v27 = vpop.permute.xlu1 %1760 }
 0x3d7   : > { %v1798_v55 = vsel %vm1796_vm0, %v1717_v25, %v1751_v39  ;;  %v1803_v6 = vsel %vm1796_vm0, %v1722_v51, %v1761_v27 }
 0x3d8   : > { %v1815_v47 = vsel %vm1813_vm1, %v1798_v55, 0.0  ;;  %v1820_v45 = vsel %vm1813_vm1, %v1803_v6, 0.0 }
 0x3d9   : > { %1831 = vst [vmem:[%s3226_s11 + $0x8] sm:$0xff] %v1815_v47  ;;  %1836 = vst [vmem:[%s3226_s11 + $0x30] sm:$0xff] %v1820_v45 }
 0x3da   : > { %v1763_v40 = vpop.permute.xlu0 %1762  ;;  %v1757_v4 = vpop.permute.xlu1 %1756 }
 0x3db   : > { %v1804_v3 = vsel %vm1796_vm0, %v1723_v44, %v1763_v40  ;;  %v1801_v14 = vsel %vm1796_vm0, %v1720_v10, %v1757_v4 }
 0x3dc   : > { %v1821_v5 = vsel %vm1813_vm1, %v1804_v3, 0.0  ;;  %v1818_v18 = vsel %vm1813_vm1, %v1801_v14, 0.0 }
 0x3dd   : > { %1837 = vst [vmem:[%s3226_s11 + $0x38] sm:$0xff] %v1821_v5  ;;  %1834 = vst [vmem:[%s3226_s11 + $0x20] sm:$0xff] %v1818_v18 }
 0x3de   : > { %v1759_v49 = vpop.permute.xlu0 %1758  ;;  %v1769_v37 = vpop.permute.xlu1 %1768 }
 0x3df   : > { %v1802_v23 = vsel %vm1796_vm0, %v1721_v12, %v1759_v49  ;;  %v1807_v11 = vsel %vm1796_vm0, %v1726_v32, %v1769_v37 }
 0x3e0   : > { %v1819_v31 = vsel %vm1813_vm1, %v1802_v23, 0.0  ;;  %v1824_v0 = vsel %vm1813_vm1, %v1807_v11, 0.0 }
 0x3e1   : > { %1835 = vst [vmem:[%s3226_s11 + $0x28] sm:$0xff] %v1819_v31  ;;  %1840 = vst [vmem:[%s3226_s11 + $0x50] sm:$0xff] %v1824_v0 }
 0x3e2   : > { %v1771_v35 = vpop.permute.xlu0 %1770  ;;  %v1765_v21 = vpop.permute.xlu1 %1764 }
 0x3e3   : > { %v1808_v46 = vsel %vm1796_vm0, %v1727_v38, %v1771_v35  ;;  %v1805_v20 = vsel %vm1796_vm0, %v1724_v13, %v1765_v21 }
 0x3e4   : > { %v1825_v59 = vsel %vm1813_vm1, %v1808_v46, 0.0  ;;  %v1822_v57 = vsel %vm1813_vm1, %v1805_v20, 0.0 }
 0x3e5   : > { %1841 = vst [vmem:[%s3226_s11 + $0x58] sm:$0xff] %v1825_v59  ;;  %1838 = vst [vmem:[%s3226_s11 + $0x40] sm:$0xff] %v1822_v57 }
 0x3e6   : > { %v1767_v34 = vpop.permute.xlu0 %1766  ;;  %v1773_v60 = vpop.permute.xlu1 %1772 }
 0x3e7   : > { %v1806_v26 = vsel %vm1796_vm0, %v1725_v43, %v1767_v34  ;;  %v1809_v63 = vsel %vm1796_vm0, %v1728_v41, %v1773_v60 }
 0x3e8   : > { %v1823_v16 = vsel %vm1813_vm1, %v1806_v26, 0.0  ;;  %v1826_v61 = vsel %vm1813_vm1, %v1809_v63, 0.0 }
 0x3e9   : > { %1839 = vst [vmem:[%s3226_s11 + $0x48] sm:$0xff] %v1823_v16  ;;  %1842 = vst [vmem:[%s3226_s11 + $0x60] sm:$0xff] %v1826_v61 }
 0x3eb   : > { %v1775_v53 = vpop.permute.xlu0 %1774 }
 0x3ec   : > { %v1810_v48 = vsel %vm1796_vm0, %v1729_v56, %v1775_v53  ;;  %v1777_v7 = vpop.permute.xlu1 %1776 }
 0x3ed   : > { %v1827_v2 = vsel %vm1813_vm1, %v1810_v48, 0.0  ;;  %v1811_v30 = vsel %vm1796_vm0, %v1730_v1, %v1777_v7 }
 0x3ee   : > { %1843 = vst [vmem:[%s3226_s11 + $0x68] sm:$0xff] %v1827_v2  ;;  %v1828_v50 = vsel %vm1813_vm1, %v1811_v30, 0.0 }
 0x3ef   : > { %1844 = vst [vmem:[%s3226_s11 + $0x70] sm:$0xff] %v1828_v50  ;;  %v1779_v15 = vpop.permute.xlu0 %1778 }
 0x3f0   : > { %v1812_v54 = vsel %vm1796_vm0, %v1731_v24, %v1779_v15 }
 0x3f1   : > { %v1829_v8 = vsel %vm1813_vm1, %v1812_v54, 0.0 }
 0x3f2   : > { %1845 = vst [vmem:[%s3226_s11 + $0x78] sm:$0xff] %v1829_v8 }
 0x3f3   : > { %2334 = shalt.err (!%p2331_p3)
}
 0x3f4   : > { %s2335_s26 = scalar_lea.hbm %s3291_s17, 2048  ;;  %s2339_s10 = scalar_lea.hbm %s3346_s6, 4096 }
 0x3f5   : > { %p2336_p4 = scmp.ne.s32.totalorder %s3291_s17, %s2335_s26  ;;  %p2340_p9 = scmp.lt.s32.totalorder %s3291_s17, %s3346_s6 }
 0x3f6   : > { %p2341_p10 = scmp.lt.s32.totalorder %s2339_s10, %s2335_s26 }
 0x3f7   : > { %p2337_p7 = pnand %p2336_p4, %p2464_p5 }
 0x3f8   : > { %p2342_p11 = por %p2341_p10, %p2340_p9 }
 0x3f9   : > { %p2338_p8 = pneg %p2337_p7 }
 0x3fb   : > { %p2343_p12 = pnand %p2342_p11, %p2338_p8 }
 0x3fd   : > { %2346 = shalt.err (!%p2343_p12)
}
 0x3fe   : > { %s2389_s12 = smov 128   ;;  %s2390_s15 = smov 8  }
 0x3ff   : > { %2083 = dma.vmem_to_hbm [thread:$0]  (%p2464_p5), %s3293_s14, 2048, %s3291_s17, %s3300_s25, %s2389_s12, %s2389_s12, %s2390_s15  }
 0x400 PF: > { %p2089_p13 = scmp.ge.s32.totalorder %s2381_s24, 2  ;;  %s1875_s16 = sand.u32 1, %s2369_s21  }
 0x401   : > { %s1876_s18 = scalar_lea.sflag [#allocation3], %s1875_s16 }
 0x402   : > { %p2086_p0 = pnand %p2089_p13, %p2468_p6 }
 0x404   : > { %p2087_p1 = pneg %p2086_p0 }
 0x406   : > { %2364 = dma.done.wait (%p2087_p1), %s1876_s18, 2048  }
 0x407   : > { %2366 = vsyncadd (%p2087_p1), %s1876_s18, 4294965248  ;;  %p16_p2 = scmp.ge.s32.totalorder %s2451_s27, 4   ;;  %s3367_s21 = smov %s2373_s22 }
 0x408   : > { %s3368_s22 = smov %s2377_s23  ;;  %s3369_s23 = smov %s2462_s30 }
 0x409   : > { %s3370_s24 = smov %s2451_s27  ;;  %18 = sbr.rel (!%p16_p2) target bundleno = 3 (0x3), region = 82 }
 0x40e   :  { %1881 = vsyncpa [#allocation3], 1 }
 0x40f   :  { %1883 = vsyncpa [#allocation3 + $0x1], 1 }

</bundles_post_ra>
